<compile_context>
chip_gen: v7x
topology: tpu7x:2x2x1
jax: 0.10.0
libtpu: 0.0.40
codegen_flags: <defaults>
</compile_context>

<pallas_src>
import functools

import jax
import jax.numpy as jnp
from jax import lax
from jax.experimental import pallas as pl
from jax.experimental.pallas import tpu as pltpu

NB_PAD = 128   # lane-padded number of histogram bins (num_bins <= NB_PAD)
_W_COLS = 8    # stats columns: [count, conf_hi, acc, conf_lo, 0, 0, 0, 0]


def _round_up(x, m):
    return ((x + m - 1) // m) * m


def _sublane_multiple(itemsize):
    # 8 rows per sublane tile for 32-bit, 16 for bf16, 32 for int8/fp8.
    return max(8, 32 // max(int(itemsize), 1))


def _default_num_parts():
    """TensorCores per chip: 2 on v7x, 1 on v5e/v6e.  Falls back to 1."""
    try:
        info = pltpu.get_tpu_info()
        for attr in ("num_tensorcores", "tensorcore_count", "num_cores",
                     "core_count", "num_tensor_cores"):
            v = getattr(info, attr, None)
            if v:
                return int(min(max(int(v), 1), 8))
    except Exception:
        pass
    return 1


def _pick_tiles(n, c, itemsize, num_parts):
    """Return (tile_n, sub_n): DMA-block rows and in-kernel sub-chunk rows."""
    align = _sublane_multiple(itemsize)
    # Double-buffered probas + labels stream budget (safe on v5e/v6e/v7x).
    stream_budget = 12 * 1024 * 1024
    bytes_per_row = 2 * (c * itemsize + 4)
    max_rows = max(stream_budget // max(bytes_per_row, 1), align)
    per_part = _round_up(max(pl.cdiv(n, num_parts), 1), align)
    tile = min(32768, max_rows, per_part)
    tile = max(align, (tile // align) * align)
    sub = min(512, tile)
    sub = max(align, (sub // align) * align)
    tile = _round_up(tile, sub)
    return tile, sub


def _hist_kernel(probas_ref, labels_ref, hist_ref, w_ref, *, num_bins, sub_n):
    tile_n, c = probas_ref.shape
    num_sub = tile_n // sub_n

    @pl.when(pl.program_id(1) == 0)
    def _():
        hist_ref[...] = jnp.zeros_like(hist_ref)
        # Stats scratch: column 0 (count weight) is constant 1, columns 4..7
        # stay 0 forever; columns 1..3 are rewritten every sub-chunk.
        w_ref[...] = jnp.zeros_like(w_ref)
        w_ref[:, 0:1] = jnp.ones((sub_n, 1), jnp.float32)

    # Constants hoisted out of the sub-chunk loop (JAX does not CSE these).
    lane = lax.broadcasted_iota(jnp.int32, (1, NB_PAD), 1)
    lane_f = lane.astype(jnp.float32)
    lower = lane_f / num_bins
    # Fold `lane < num_bins` validity into the upper edge: invalid lanes get
    # upper == 0.0, which no strictly-positive confidence can satisfy.
    upper = jnp.where(lane < num_bins, (lane_f + 1.0) / num_bins, 0.0)
    col = lax.broadcasted_iota(jnp.int32, (sub_n, c), 1)

    def body(s, acc):
        start = pl.multiple_of(s * sub_n, sub_n)
        probas = probas_ref[pl.ds(start, sub_n), :]           # native dtype
        labels = labels_ref[pl.ds(start, sub_n), :]           # (S, 1) int32

        # Top-label confidence and first-index argmax (ties -> lowest index).
        conf_n = jnp.max(probas, axis=-1, keepdims=True)      # (S, 1)
        pred = jnp.min(jnp.where(probas == conf_n, col, c), axis=-1,
                       keepdims=True)
        conf = conf_n.astype(jnp.float32)
        acc_row = (pred == labels).astype(jnp.float32)        # (S, 1)

        # Strict-interval binning: bin j iff  j/B < conf < (j+1)/B.
        in_bin = (lower < conf) & (conf < upper)               # (S, NB_PAD)
        onehot = in_bin.astype(jnp.bfloat16)

        # conf split into bf16-exact high part + small low part so the bf16
        # MXU pass keeps ~f32 accuracy in the accumulated sums.
        conf_hi = conf.astype(jnp.bfloat16).astype(jnp.float32)
        w_ref[:, 1:2] = conf_hi
        w_ref[:, 2:3] = acc_row
        w_ref[:, 3:4] = conf - conf_hi
        w = w_ref[...].astype(jnp.bfloat16)                    # (S, 8)

        # Single bf16 MXU contraction over the row axis -> (8, NB_PAD) f32.
        return acc + lax.dot_general(
            w, onehot, (((0,), (0,)), ((), ())),
            preferred_element_type=jnp.float32)

    acc0 = jnp.zeros((_W_COLS, NB_PAD), jnp.float32)
    if num_sub == 1:
        partial = body(0, acc0)
    else:
        partial = lax.fori_loop(0, num_sub, body, acc0, unroll=num_sub <= 4)
    hist_ref[...] += partial


def _top_label_histogram(probas, labels, *, num_bins, num_parts=None,
                         tile_n=None, sub_n=None):
    n, c = probas.shape
    assert num_bins <= NB_PAD

    if num_parts is None:
        num_parts = _default_num_parts()

    itemsize = probas.dtype.itemsize
    align = _sublane_multiple(itemsize)
    auto_tile, auto_sub = _pick_tiles(n, c, itemsize, num_parts)
    if tile_n is None:
        tile_n = auto_tile
    else:
        tile_n = _round_up(int(tile_n), align)
    if sub_n is None:
        sub_n = min(auto_sub, tile_n)
    else:
        sub_n = min(_round_up(int(sub_n), align), tile_n)
    sub_n = max(align, (sub_n // align) * align)
    tile_n = _round_up(tile_n, sub_n)

    n_pad = _round_up(n, tile_n * num_parts)
    tiles_per_part = n_pad // (tile_n * num_parts)

    # Zero-padded rows have conf == 0, which satisfies no strict interval,
    # so they contribute nothing to any bin.
    probas_pad = jnp.pad(probas, ((0, n_pad - n), (0, 0)))
    labels_pad = jnp.pad(labels.astype(jnp.int32).reshape(n, 1),
                         ((0, n_pad - n), (0, 0)))

    kernel = functools.partial(_hist_kernel, num_bins=num_bins, sub_n=sub_n)

    # VMEM budget: double-buffered (tile_n, C) probas + (tile_n, 1) labels
    # streams, per-sub-chunk intermediates (onehot, lane-padded w scratch,
    # iotas, f32 temps), the (8, 128) output block, plus headroom.
    stream_bytes = 2 * tile_n * (c * itemsize + 4)
    interm_bytes = sub_n * (c * 8 + NB_PAD * 8 + 128 * 4 + 64)
    out_bytes = 2 * _W_COLS * NB_PAD * 4
    vmem_limit = int(min(max(stream_bytes + interm_bytes + out_bytes
                             + (4 << 20), 16 << 20), 32 << 20))

    hist = pl.pallas_call(
        kernel,
        out_shape=jax.ShapeDtypeStruct((num_parts, _W_COLS, NB_PAD),
                                       jnp.float32),
        grid_spec=pltpu.PrefetchScalarGridSpec(
            num_scalar_prefetch=0,
            grid=(num_parts, tiles_per_part),
            in_specs=[
                pl.BlockSpec((tile_n, c),
                             lambda p, t: (p * tiles_per_part + t, 0)),
                pl.BlockSpec((tile_n, 1),
                             lambda p, t: (p * tiles_per_part + t, 0)),
            ],
            out_specs=pl.BlockSpec((None, _W_COLS, NB_PAD),
                                   lambda p, t: (p, 0, 0)),
            scratch_shapes=[pltpu.VMEM((sub_n, _W_COLS), jnp.float32)],
        ),
        compiler_params=pltpu.CompilerParams(
            dimension_semantics=("parallel", "arbitrary"),
            vmem_limit_bytes=vmem_limit),
    )(probas_pad, labels_pad)

    return jnp.sum(hist, axis=0)          # (_W_COLS, NB_PAD)


def top_label_calibration_plot(probas, labels, *, num_bins=15, num_parts=None,
                               tile_n=None, sub_n=None):
    """Per-bin confidences / accuracies / counts (NaN for empty bins)."""
    hist = _top_label_histogram(probas, labels, num_bins=num_bins,
                                num_parts=num_parts, tile_n=tile_n,
                                sub_n=sub_n)
    counts = hist[0, :num_bins]
    conf_sum = hist[1, :num_bins] + hist[3, :num_bins]
    acc_sum = hist[2, :num_bins]
    safe = jnp.maximum(counts, 1.0)
    confs = jnp.where(counts > 0, conf_sum / safe, jnp.nan)
    accs = jnp.where(counts > 0, acc_sum / safe, jnp.nan)
    return {"confs": confs, "accs": accs, "n_samples": counts}


def calibration_error(confs, accs, n_samples, p=1):
    probas_bin = n_samples / jnp.nansum(n_samples)
    return jnp.nansum(probas_bin * jnp.abs(confs - accs) ** p) ** (1.0 / p)


def top_label_calibration_error(probas, labels, *, num_bins=15, p=1,
                                num_parts=None, tile_n=None, sub_n=None):
    r = top_label_calibration_plot(probas, labels, num_bins=num_bins,
                                   num_parts=num_parts, tile_n=tile_n,
                                   sub_n=sub_n)
    return calibration_error(r["confs"], r["accs"], r["n_samples"], p)


def _reference_top_label_calibration_error(probas, labels, num_bins=15, p=1):
    """Pure-JAX eager reference matching the PyTorch module semantics."""
    probas = probas.astype(jnp.float32)
    conf = jnp.max(probas, axis=-1)
    pred = jnp.argmax(probas, axis=-1)
    acc = (pred == labels).astype(jnp.float32)
    bins = jnp.arange(num_bins + 1, dtype=jnp.float32) / num_bins
    confs, accs, ns = [], [], []
    for i in range(num_bins):
        in_bin = (bins[i] < conf) & (conf < bins[i + 1])
        n = jnp.sum(in_bin.astype(jnp.float32))
        c_sum = jnp.sum(jnp.where(in_bin, conf, 0.0))
        a_sum = jnp.sum(jnp.where(in_bin, acc, 0.0))
        safe = jnp.maximum(n, 1.0)
        confs.append(jnp.where(n > 0, c_sum / safe, jnp.nan))
        accs.append(jnp.where(n > 0, a_sum / safe, jnp.nan))
        ns.append(n)
    confs = jnp.stack(confs)
    accs = jnp.stack(accs)
    ns = jnp.stack(ns)
    probas_bin = ns / jnp.nansum(ns)
    return jnp.nansum(probas_bin * jnp.abs(confs - accs) ** p) ** (1.0 / p)


if __name__ == "__main__":
    key = jax.random.PRNGKey(0)
    k1, k2 = jax.random.split(key)

    N, C = 256, 16
    logits = 2.0 * jax.random.normal(k1, (N, C), dtype=jnp.float32)
    probas = jax.nn.softmax(logits, axis=-1)
    labels = jax.random.randint(k2, (N,), 0, C, dtype=jnp.int32)

    ce = top_label_calibration_error(probas, labels, num_bins=15, p=1)
    ce = jax.block_until_ready(ce)

    ref = _reference_top_label_calibration_error(probas, labels,
                                                 num_bins=15, p=1)

    assert jnp.allclose(ce, ref, rtol=1e-4, atol=5e-5), (ce, ref)
    print("KERNEL_OK")
</pallas_src>

<mosaic_0001>
module attributes {stable_mosaic.version = 11 : i64} {
  func.func @_hist_kernel(%arg0: i32, %arg1: i32, %arg2: memref<256x16xf32, #tpu.memory_space<vmem>>, %arg3: memref<256x1xi32, #tpu.memory_space<vmem>>, %arg4: memref<1x8x128xf32, #tpu.memory_space<vmem>>, %arg5: memref<256x8xf32, #tpu.memory_space<vmem>>) attributes {dimension_semantics = [#tpu.dimension_semantics<parallel>, #tpu.dimension_semantics<arbitrary>], iteration_bounds = array<i64: 1, 1>, scalar_prefetch = 0 : i64, scratch_operands = 1 : i64, tpu.core_type = #tpu.core_type<tc>, window_params = [{transform_indices = @transform_0, window_bounds = array<i64: 256, 16>}, {transform_indices = @transform_1, window_bounds = array<i64: 256, 1>}, {transform_indices = @transform_2, window_bounds = array<i64: 1, 8, 128>}]} {
    %c0_i32 = arith.constant 0 : i32
    %0 = arith.cmpi eq, %arg1, %c0_i32 : i32
    %1 = arith.extui %0 : i1 to i32
    %c0_i32_0 = arith.constant 0 : i32
    %2 = arith.cmpi ne, %1, %c0_i32_0 : i32
    scf.if %2 {
      %cst_21 = arith.constant 0.000000e+00 : f32
      %59 = vector.broadcast %cst_21 : f32 to vector<8x128xf32>
      %c0_22 = arith.constant 0 : index
      %c0_23 = arith.constant 0 : index
      %c0_24 = arith.constant 0 : index
      %60 = vector.load %arg4[%c0_22, %c0_23, %c0_24] : memref<1x8x128xf32, #tpu.memory_space<vmem>>, vector<1x8x128xf32>
      %61 = vector.shape_cast %60 : vector<1x8x128xf32> to vector<8x128xf32>
      %62 = vector.shape_cast %59 : vector<8x128xf32> to vector<1x8x128xf32>
      tpu.vector_store %arg4[%c0_22, %c0_23, %c0_24], %62 {strides = array<i32>} : memref<1x8x128xf32, #tpu.memory_space<vmem>>, vector<1x8x128xf32>,
      %cst_25 = arith.constant 0.000000e+00 : f32
      %63 = vector.broadcast %cst_25 : f32 to vector<256x8xf32>
      %c0_26 = arith.constant 0 : index
      %c0_27 = arith.constant 0 : index
      %64 = vector.load %arg5[%c0_26, %c0_27] : memref<256x8xf32, #tpu.memory_space<vmem>>, vector<256x8xf32>
      tpu.vector_store %arg5[%c0_26, %c0_27], %63 {strides = array<i32>} : memref<256x8xf32, #tpu.memory_space<vmem>>, vector<256x8xf32>,
      %cst_28 = arith.constant 1.000000e+00 : f32
      %65 = vector.broadcast %cst_28 : f32 to vector<256x1xf32>
      %c0_29 = arith.constant 0 : index
      %c0_30 = arith.constant 0 : index
      %66 = vector.load %arg5[%c0_29, %c0_30] : memref<256x8xf32, #tpu.memory_space<vmem>>, vector<256x1xf32>
      tpu.vector_store %arg5[%c0_29, %c0_30], %65 {strides = array<i32>} : memref<256x8xf32, #tpu.memory_space<vmem>>, vector<256x1xf32>,
    } else {
    }
    %3 = tpu.iota {dimensions = array<i32: 1>} : vector<1x128xi32>
    %4 = arith.sitofp %3 : vector<1x128xi32> to vector<1x128xf32>
    %cst = arith.constant 1.500000e+01 : f32
    %5 = vector.broadcast %cst : f32 to vector<1x128xf32>
    %6 = arith.divf %4, %5 : vector<1x128xf32>
    %c15_i32 = arith.constant 15 : i32
    %7 = vector.broadcast %c15_i32 : i32 to vector<1x128xi32>
    %8 = arith.cmpi slt, %3, %7 : vector<1x128xi32>
    %cst_1 = arith.constant 1.000000e+00 : f32
    %9 = vector.broadcast %cst_1 : f32 to vector<1x128xf32>
    %10 = arith.addf %4, %9 : vector<1x128xf32>
    %cst_2 = arith.constant 1.500000e+01 : f32
    %11 = vector.broadcast %cst_2 : f32 to vector<1x128xf32>
    %12 = arith.divf %10, %11 : vector<1x128xf32>
    %cst_3 = arith.constant 0.000000e+00 : f32
    %13 = vector.broadcast %cst_3 : f32 to vector<1x128xf32>
    %14 = arith.select %8, %12, %13 : vector<1x128xi1>, vector<1x128xf32>
    %15 = tpu.iota {dimensions = array<i32: 1>} : vector<256x16xi32>
    %cst_4 = arith.constant 0.000000e+00 : f32
    %16 = vector.broadcast %cst_4 : f32 to vector<8x128xf32>
    %c0_i32_5 = arith.constant 0 : i32
    %17 = tpu.assume_multiple %c0_i32_5, 256 : i32
    %18 = arith.index_cast %17 : i32 to index
    %c0 = arith.constant 0 : index
    %19 = vector.load %arg2[%18, %c0] : memref<256x16xf32, #tpu.memory_space<vmem>>, vector<256x16xf32>
    %20 = arith.index_cast %17 : i32 to index
    %c0_6 = arith.constant 0 : index
    %21 = vector.load %arg3[%20, %c0_6] : memref<256x1xi32, #tpu.memory_space<vmem>>, vector<256x1xi32>
    %cst_7 = arith.constant dense<0xFF800000> : vector<256xf32>
    %22 = vector.multi_reduction <maximumf>, %19, %cst_7 [1] : vector<256x16xf32> to vector<256xf32>
    %23 = vector.shape_cast %22 : vector<256xf32> to vector<256x1xf32>
    %24 = vector.broadcast %23 : vector<256x1xf32> to vector<256x16xf32>
    %25 = arith.cmpf oeq, %19, %24 : vector<256x16xf32>
    %c16_i32 = arith.constant 16 : i32
    %26 = vector.broadcast %c16_i32 : i32 to vector<256x16xi32>
    %27 = arith.select %25, %15, %26 : vector<256x16xi1>, vector<256x16xi32>
    %cst_8 = arith.constant dense<2147483647> : vector<256xi32>
    %28 = vector.multi_reduction <minsi>, %27, %cst_8 [1] : vector<256x16xi32> to vector<256xi32>
    %29 = vector.shape_cast %28 : vector<256xi32> to vector<256x1xi32>
    %30 = arith.cmpi eq, %29, %21 : vector<256x1xi32>
    %31 = arith.extui %30 : vector<256x1xi1> to vector<256x1xi32>
    %32 = arith.sitofp %31 : vector<256x1xi32> to vector<256x1xf32>
    %33 = vector.broadcast %6 : vector<1x128xf32> to vector<256x128xf32>
    %34 = vector.broadcast %23 : vector<256x1xf32> to vector<256x128xf32>
    %35 = arith.cmpf olt, %33, %34 : vector<256x128xf32>
    %36 = vector.broadcast %23 : vector<256x1xf32> to vector<256x128xf32>
    %37 = vector.broadcast %14 : vector<1x128xf32> to vector<256x128xf32>
    %38 = arith.cmpf olt, %36, %37 : vector<256x128xf32>
    %39 = arith.andi %35, %38 : vector<256x128xi1>
    %40 = arith.extui %39 : vector<256x128xi1> to vector<256x128xi32>
    %41 = arith.sitofp %40 : vector<256x128xi32> to vector<256x128xf32>
    %42 = arith.truncf %41 : vector<256x128xf32> to vector<256x128xbf16>
    %43 = arith.truncf %23 : vector<256x1xf32> to vector<256x1xbf16>
    %44 = arith.extf %43 : vector<256x1xbf16> to vector<256x1xf32>
    %c0_9 = arith.constant 0 : index
    %c1 = arith.constant 1 : index
    %45 = vector.load %arg5[%c0_9, %c1] : memref<256x8xf32, #tpu.memory_space<vmem>>, vector<256x1xf32>
    tpu.vector_store %arg5[%c0_9, %c1], %44 {strides = array<i32>} : memref<256x8xf32, #tpu.memory_space<vmem>>, vector<256x1xf32>,
    %c0_10 = arith.constant 0 : index
    %c2 = arith.constant 2 : index
    %46 = vector.load %arg5[%c0_10, %c2] : memref<256x8xf32, #tpu.memory_space<vmem>>, vector<256x1xf32>
    tpu.vector_store %arg5[%c0_10, %c2], %32 {strides = array<i32>} : memref<256x8xf32, #tpu.memory_space<vmem>>, vector<256x1xf32>,
    %47 = arith.subf %23, %44 : vector<256x1xf32>
    %c0_11 = arith.constant 0 : index
    %c3 = arith.constant 3 : index
    %48 = vector.load %arg5[%c0_11, %c3] : memref<256x8xf32, #tpu.memory_space<vmem>>, vector<256x1xf32>
    tpu.vector_store %arg5[%c0_11, %c3], %47 {strides = array<i32>} : memref<256x8xf32, #tpu.memory_space<vmem>>, vector<256x1xf32>,
    %c0_12 = arith.constant 0 : index
    %c0_13 = arith.constant 0 : index
    %49 = vector.load %arg5[%c0_12, %c0_13] : memref<256x8xf32, #tpu.memory_space<vmem>>, vector<256x8xf32>
    %50 = arith.truncf %49 : vector<256x8xf32> to vector<256x8xbf16>
    %cst_14 = arith.constant dense<0.000000e+00> : vector<8x128xf32>
    %51 = tpu.matmul %50, %42, %cst_14 {dimension_numbers = #tpu.dot_dimension_numbers<[0], [0], [1], [1], [0, 1, 1, 1], [], []>} : vector<256x8xbf16>, vector<256x128xbf16>, vector<8x128xf32> -> vector<8x128xf32>
    %52 = arith.addf %16, %51 : vector<8x128xf32>
    %c0_15 = arith.constant 0 : index
    %c0_16 = arith.constant 0 : index
    %c0_17 = arith.constant 0 : index
    %53 = vector.load %arg4[%c0_15, %c0_16, %c0_17] : memref<1x8x128xf32, #tpu.memory_space<vmem>>, vector<1x8x128xf32>
    %54 = vector.shape_cast %53 : vector<1x8x128xf32> to vector<8x128xf32>
    %55 = arith.addf %54, %52 : vector<8x128xf32>
    %c0_18 = arith.constant 0 : index
    %c0_19 = arith.constant 0 : index
    %c0_20 = arith.constant 0 : index
    %56 = vector.load %arg4[%c0_18, %c0_19, %c0_20] : memref<1x8x128xf32, #tpu.memory_space<vmem>>, vector<1x8x128xf32>
    %57 = vector.shape_cast %56 : vector<1x8x128xf32> to vector<8x128xf32>
    %58 = vector.shape_cast %55 : vector<8x128xf32> to vector<1x8x128xf32>
    tpu.vector_store %arg4[%c0_18, %c0_19, %c0_20], %58 {strides = array<i32>} : memref<1x8x128xf32, #tpu.memory_space<vmem>>, vector<1x8x128xf32>,
    return
  }
  func.func @transform_0(%arg0: i32, %arg1: i32) -> (i32, i32) {
    %c1_i32 = arith.constant 1 : i32
    %0 = arith.muli %arg0, %c1_i32 : i32
    %1 = arith.addi %0, %arg1 : i32
    %c0_i32 = arith.constant 0 : i32
    %c0_i32_0 = arith.constant 0 : i32
    return %1, %c0_i32 : i32, i32
  }
  func.func @transform_1(%arg0: i32, %arg1: i32) -> (i32, i32) {
    %c1_i32 = arith.constant 1 : i32
    %0 = arith.muli %arg0, %c1_i32 : i32
    %1 = arith.addi %0, %arg1 : i32
    %c0_i32 = arith.constant 0 : i32
    %c0_i32_0 = arith.constant 0 : i32
    return %1, %c0_i32 : i32, i32
  }
  func.func @transform_2(%arg0: i32, %arg1: i32) -> (i32, i32, i32) {
    %c0_i32 = arith.constant 0 : i32
    %c0_i32_0 = arith.constant 0 : i32
    %c0_i32_1 = arith.constant 0 : i32
    return %arg0, %c0_i32, %c0_i32_0 : i32, i32, i32
  }
}

</mosaic_0001>

<bundles_post_ra>
// kernel: tpu_custom_call.1
= control target key start
LH: loop header
LB: loop body
LE: loop exit
PB: predicated region body
PF: predicated region fallthrough
CT: control target
= control target key end

     0   :  { %vm201_vm0 = vcmask 130048   ;;  %s3458_s0 = inlined_call_operand.vmem [shape: f32[256,16], index: 0, kind: input, shape index: {}]   ;;  %s3459_s1 = inlined_call_operand.vmem [shape: s32[256,1], index: 1, kind: input, shape index: {}]   ;;  %s3460_s2 = inlined_call_operand.hbm [shape: f32[1,8,128], index: 2, kind: output, shape index: {}]  }
   0x1   :  { %v1820_v0 = vld [vmem:[%s3458_s0 + $0x80] sm:$0xff]  ;;  %v1830_v2 = vld [vmem:[%s3458_s0 + $0x88] sm:$0xff]  ;;  %v1848_v8 = vld [vmem:[%s3458_s0 + $0x90] sm:$0xff] }
   0x2   :  { %v1825_v1 = vld [vmem:[%s3458_s0] sm:$0xff]  ;;  %v250_v3 = vsel %vm201_vm0, %v1820_v0, -inf  ;;  %v1839_v5 = vld [vmem:[%s3458_s0 + $0x8] sm:$0xff]  ;;  %v253_v6 = vsel %vm201_vm0, %v1830_v2, -inf  ;;  %v1853_v9 = vld [vmem:[%s3458_s0 + $0x98] sm:$0xff]  ;;  %v256_v10 = vsel %vm201_vm0, %v1848_v8, -inf }
   0x3   :  { %v202_v4 = vsel %vm201_vm0, %v1825_v1, -inf  ;;  %251 = vmax.xlane.f32.xlu0 %v250_v3  ;;  %v205_v7 = vsel %vm201_vm0, %v1839_v5, -inf  ;;  %v259_v11 = vsel %vm201_vm0, %v1853_v9, -inf  ;;  %v1862_v12 = vld [vmem:[%s3458_s0 + $0x10] sm:$0xff]  ;;  %v1867_v13 = vld [vmem:[%s3458_s0 + $0x18] sm:$0xff] }
   0x4   :  { %203 = vmax.xlane.f32.xlu1 %v202_v4  ;;  %v208_v14 = vsel %vm201_vm0, %v1862_v12, -inf  ;;  %v211_v15 = vsel %vm201_vm0, %v1867_v13, -inf }
   0x7   :  { %254 = vmax.xlane.f32.xlu0 %v253_v6 }
   0x8   :  { %206 = vmax.xlane.f32.xlu1 %v205_v7 }
   0xb   :  { %257 = vmax.xlane.f32.xlu0 %v256_v10 }
   0xc   :  { %260 = vmax.xlane.f32.xlu1 %v259_v11 }
   0xd   :  { %7 = vsyncpa [#allocation4], 0  ;;  %v1876_v16 = vld [vmem:[%s3458_s0 + $0xa0] sm:$0xff]  ;;  %v1881_v17 = vld [vmem:[%s3458_s0 + $0xa8] sm:$0xff]  ;;  %vm62_vm1 = vcmask 64512   ;;  %vm95_vm2 = vcmask 7168   ;;  %v128_v6 = vlaneseq }
   0xe   :  { %v262_v18 = vsel %vm201_vm0, %v1876_v16, -inf  ;;  %v265_v19 = vsel %vm201_vm0, %v1881_v17, -inf  ;;  %v1890_v20 = vld [vmem:[%s3458_s0 + $0x20] sm:$0xff]  ;;  %v1895_v21 = vld [vmem:[%s3458_s0 + $0x28] sm:$0xff]  ;;  %v1904_v24 = vld [vmem:[%s3458_s0 + $0xb0] sm:$0xff]  ;;  %v3465_v3 = vmov 0.0  }
   0xf   :  { %209 = vmax.xlane.f32.xlu0 %v208_v14  ;;  %v214_v22 = vsel %vm201_vm0, %v1890_v20, -inf  ;;  %v217_v23 = vsel %vm201_vm0, %v1895_v21, -inf  ;;  %v1909_v25 = vld [vmem:[%s3458_s0 + $0xb8] sm:$0xff]  ;;  %v268_v26 = vsel %vm201_vm0, %v1904_v24, -inf  ;;  %v1918_v28 = vld [vmem:[%s3458_s0 + $0x30] sm:$0xff]  ;;  %v1932_v32 = vld [vmem:[%s3458_s0 + $0xc0] sm:$0xff] }
  0x10   :  { %212 = vmax.xlane.f32.xlu1 %v211_v15  ;;  %v271_v27 = vsel %vm201_vm0, %v1909_v25, -inf  ;;  %v1923_v29 = vld [vmem:[%s3458_s0 + $0x38] sm:$0xff]  ;;  %v220_v30 = vsel %vm201_vm0, %v1918_v28, -inf  ;;  %v1937_v33 = vld [vmem:[%s3458_s0 + $0xc8] sm:$0xff]  ;;  %v274_v34 = vsel %vm201_vm0, %v1932_v32, -inf  ;;  %v1946_v36 = vld [vmem:[%s3458_s0 + $0x40] sm:$0xff] }
  0x11   :  { %v223_v31 = vsel %vm201_vm0, %v1923_v29, -inf  ;;  %v277_v35 = vsel %vm201_vm0, %v1937_v33, -inf  ;;  %v1951_v37 = vld [vmem:[%s3458_s0 + $0x48] sm:$0xff]  ;;  %v226_v38 = vsel %vm201_vm0, %v1946_v36, -inf  ;;  %v1960_v40 = vld [vmem:[%s3458_s0 + $0xd0] sm:$0xff]  ;;  %v1965_v41 = vld [vmem:[%s3458_s0 + $0xd8] sm:$0xff] }
  0x12   :  { %v229_v39 = vsel %vm201_vm0, %v1951_v37, -inf  ;;  %v280_v42 = vsel %vm201_vm0, %v1960_v40, -inf  ;;  %v283_v43 = vsel %vm201_vm0, %v1965_v41, -inf  ;;  %v1974_v44 = vld [vmem:[%s3458_s0 + $0x50] sm:$0xff]  ;;  %v1979_v45 = vld [vmem:[%s3458_s0 + $0x58] sm:$0xff]  ;;  %v1988_v48 = vld [vmem:[%s3458_s0 + $0xe0] sm:$0xff] }
  0x13   :  { %263 = vmax.xlane.f32.xlu0 %v262_v18  ;;  %v232_v46 = vsel %vm201_vm0, %v1974_v44, -inf  ;;  %v235_v47 = vsel %vm201_vm0, %v1979_v45, -inf  ;;  %v1993_v49 = vld [vmem:[%s3458_s0 + $0xe8] sm:$0xff]  ;;  %v286_v50 = vsel %vm201_vm0, %v1988_v48, -inf  ;;  %v2002_v52 = vld [vmem:[%s3458_s0 + $0x60] sm:$0xff]  ;;  %v2016_v56 = vld [vmem:[%s3458_s0 + $0xf0] sm:$0xff] }
  0x14   :  { %266 = vmax.xlane.f32.xlu1 %v265_v19  ;;  %v289_v51 = vsel %vm201_vm0, %v1993_v49, -inf  ;;  %v2007_v53 = vld [vmem:[%s3458_s0 + $0x68] sm:$0xff]  ;;  %v238_v54 = vsel %vm201_vm0, %v2002_v52, -inf  ;;  %v2021_v57 = vld [vmem:[%s3458_s0 + $0xf8] sm:$0xff]  ;;  %v292_v58 = vsel %vm201_vm0, %v2016_v56, -inf  ;;  %v2030_v60 = vld [vmem:[%s3458_s0 + $0x70] sm:$0xff] }
  0x15   :  { %v241_v55 = vsel %vm201_vm0, %v2007_v53, -inf  ;;  %v295_v59 = vsel %vm201_vm0, %v2021_v57, -inf  ;;  %v2035_v61 = vld [vmem:[%s3458_s0 + $0x78] sm:$0xff]  ;;  %v244_v62 = vsel %vm201_vm0, %v2030_v60, -inf  ;;  %79 = vst.msk [vmem:[#allocation2 + $0x80] sm:$0xff] %vm62_vm1, %v3465_v3  ;;  %80 = vst.msk [vmem:[#allocation2 + $0x88] sm:$0xff] %vm62_vm1, %v3465_v3 }
  0x16   :  { %v247_v63 = vsel %vm201_vm0, %v2035_v61, -inf  ;;  %63 = vst.msk [vmem:[#allocation2] sm:$0xff] %vm62_vm1, %v3465_v3  ;;  %64 = vst.msk [vmem:[#allocation2 + $0x8] sm:$0xff] %vm62_vm1, %v3465_v3  ;;  %v1798_v4 = vmov 1.0   ;;  %v2137_v7 = vand.u32 127, %v128_v6  ;;  %vm1162_vm11 = vcmask 15368  }
  0x17   :  { %215 = vmax.xlane.f32.xlu0 %v214_v22  ;;  %65 = vst.msk [vmem:[#allocation2 + $0x10] sm:$0xff] %vm62_vm1, %v3465_v3  ;;  %66 = vst.msk [vmem:[#allocation2 + $0x18] sm:$0xff] %vm62_vm1, %v3465_v3  ;;  %s1800_s26 = smov 2  }
  0x18   :  { %218 = vmax.xlane.f32.xlu1 %v217_v23  ;;  %67 = vst.msk [vmem:[#allocation2 + $0x20] sm:$0xff] %vm62_vm1, %v3465_v3  ;;  %68 = vst.msk [vmem:[#allocation2 + $0x28] sm:$0xff] %vm62_vm1, %v3465_v3  ;;  %v130_v10 = vcvt.s32.f32 %v2137_v7  ;;  %vm133_vm3 = vcmp.lt.s32.totalorder %v2137_v7, 15 }
  0x19   :  { %69 = vst.msk [vmem:[#allocation2 + $0x30] sm:$0xff] %vm62_vm1, %v3465_v3  ;;  %70 = vst.msk [vmem:[#allocation2 + $0x38] sm:$0xff] %vm62_vm1, %v3465_v3 }
  0x1a   :  { %71 = vst.msk [vmem:[#allocation2 + $0x40] sm:$0xff] %vm62_vm1, %v3465_v3  ;;  %72 = vst.msk [vmem:[#allocation2 + $0x48] sm:$0xff] %vm62_vm1, %v3465_v3  ;;  %v134_v11 = vadd.f32 1.0, %v130_v10  ;;  %v2141_v15 = vmul.f32 0.06666667, %v130_v10 }
  0x1b   :  { %269 = vmax.xlane.f32.xlu0 %v268_v26  ;;  %73 = vst.msk [vmem:[#allocation2 + $0x50] sm:$0xff] %vm62_vm1, %v3465_v3  ;;  %74 = vst.msk [vmem:[#allocation2 + $0x58] sm:$0xff] %vm62_vm1, %v3465_v3 }
  0x1c   :  { %272 = vmax.xlane.f32.xlu1 %v271_v27  ;;  %75 = vst.msk [vmem:[#allocation2 + $0x60] sm:$0xff] %vm62_vm1, %v3465_v3  ;;  %76 = vst.msk [vmem:[#allocation2 + $0x68] sm:$0xff] %vm62_vm1, %v3465_v3  ;;  %v135_v14 = vmul.f32 0.06666667, %v134_v11 }
  0x1d   :  { %77 = vst.msk [vmem:[#allocation2 + $0x70] sm:$0xff] %vm62_vm1, %v3465_v3  ;;  %78 = vst.msk [vmem:[#allocation2 + $0x78] sm:$0xff] %vm62_vm1, %v3465_v3 }
  0x1e   :  { %81 = vst.msk [vmem:[#allocation2 + $0x90] sm:$0xff] %vm62_vm1, %v3465_v3  ;;  %82 = vst.msk [vmem:[#allocation2 + $0x98] sm:$0xff] %vm62_vm1, %v3465_v3  ;;  %v2143_v18 = vsel %vm133_vm3, %v135_v14, 0.0 }
  0x1f   :  { %221 = vmax.xlane.f32.xlu0 %v220_v30  ;;  %83 = vst.msk [vmem:[#allocation2 + $0xa0] sm:$0xff] %vm62_vm1, %v3465_v3  ;;  %84 = vst.msk [vmem:[#allocation2 + $0xa8] sm:$0xff] %vm62_vm1, %v3465_v3 }
  0x20   :  { %224 = vmax.xlane.f32.xlu1 %v223_v31  ;;  %85 = vst.msk [vmem:[#allocation2 + $0xb0] sm:$0xff] %vm62_vm1, %v3465_v3  ;;  %86 = vst.msk [vmem:[#allocation2 + $0xb8] sm:$0xff] %vm62_vm1, %v3465_v3 }
  0x21   :  { %87 = vst.msk [vmem:[#allocation2 + $0xc0] sm:$0xff] %vm62_vm1, %v3465_v3  ;;  %88 = vst.msk [vmem:[#allocation2 + $0xc8] sm:$0xff] %vm62_vm1, %v3465_v3 }
  0x22   :  { %89 = vst.msk [vmem:[#allocation2 + $0xd0] sm:$0xff] %vm62_vm1, %v3465_v3  ;;  %90 = vst.msk [vmem:[#allocation2 + $0xd8] sm:$0xff] %vm62_vm1, %v3465_v3 }
  0x23   :  { %275 = vmax.xlane.f32.xlu0 %v274_v34  ;;  %91 = vst.msk [vmem:[#allocation2 + $0xe0] sm:$0xff] %vm62_vm1, %v3465_v3  ;;  %92 = vst.msk [vmem:[#allocation2 + $0xe8] sm:$0xff] %vm62_vm1, %v3465_v3 }
  0x24   :  { %278 = vmax.xlane.f32.xlu1 %v277_v35  ;;  %93 = vst.msk [vmem:[#allocation2 + $0xf0] sm:$0xff] %vm62_vm1, %v3465_v3  ;;  %94 = vst.msk [vmem:[#allocation2 + $0xf8] sm:$0xff] %vm62_vm1, %v3465_v3 }
  0x25   :  { %112 = vst.msk [vmem:[#allocation2 + $0x80] sm:$0xff] %vm95_vm2, %v1798_v4  ;;  %113 = vst.msk [vmem:[#allocation2 + $0x88] sm:$0xff] %vm95_vm2, %v1798_v4 }
  0x26   :  { %96 = vst.msk [vmem:[#allocation2] sm:$0xff] %vm95_vm2, %v1798_v4  ;;  %97 = vst.msk [vmem:[#allocation2 + $0x8] sm:$0xff] %vm95_vm2, %v1798_v4 }
  0x27   :  { %227 = vmax.xlane.f32.xlu0 %v226_v38  ;;  %98 = vst.msk [vmem:[#allocation2 + $0x10] sm:$0xff] %vm95_vm2, %v1798_v4  ;;  %99 = vst.msk [vmem:[#allocation2 + $0x18] sm:$0xff] %vm95_vm2, %v1798_v4 }
  0x28   :  { %230 = vmax.xlane.f32.xlu1 %v229_v39  ;;  %100 = vst.msk [vmem:[#allocation2 + $0x20] sm:$0xff] %vm95_vm2, %v1798_v4  ;;  %101 = vst.msk [vmem:[#allocation2 + $0x28] sm:$0xff] %vm95_vm2, %v1798_v4 }
  0x29   :  { %102 = vst.msk [vmem:[#allocation2 + $0x30] sm:$0xff] %vm95_vm2, %v1798_v4  ;;  %103 = vst.msk [vmem:[#allocation2 + $0x38] sm:$0xff] %vm95_vm2, %v1798_v4 }
  0x2a   :  { %104 = vst.msk [vmem:[#allocation2 + $0x40] sm:$0xff] %vm95_vm2, %v1798_v4  ;;  %105 = vst.msk [vmem:[#allocation2 + $0x48] sm:$0xff] %vm95_vm2, %v1798_v4 }
  0x2b   :  { %281 = vmax.xlane.f32.xlu0 %v280_v42  ;;  %106 = vst.msk [vmem:[#allocation2 + $0x50] sm:$0xff] %vm95_vm2, %v1798_v4  ;;  %107 = vst.msk [vmem:[#allocation2 + $0x58] sm:$0xff] %vm95_vm2, %v1798_v4 }
  0x2c   :  { %284 = vmax.xlane.f32.xlu1 %v283_v43  ;;  %108 = vst.msk [vmem:[#allocation2 + $0x60] sm:$0xff] %vm95_vm2, %v1798_v4  ;;  %109 = vst.msk [vmem:[#allocation2 + $0x68] sm:$0xff] %vm95_vm2, %v1798_v4 }
  0x2d   :  { %110 = vst.msk [vmem:[#allocation2 + $0x70] sm:$0xff] %vm95_vm2, %v1798_v4  ;;  %111 = vst.msk [vmem:[#allocation2 + $0x78] sm:$0xff] %vm95_vm2, %v1798_v4 }
  0x2e   :  { %114 = vst.msk [vmem:[#allocation2 + $0x90] sm:$0xff] %vm95_vm2, %v1798_v4  ;;  %115 = vst.msk [vmem:[#allocation2 + $0x98] sm:$0xff] %vm95_vm2, %v1798_v4 }
  0x2f   :  { %233 = vmax.xlane.f32.xlu0 %v232_v46  ;;  %116 = vst.msk [vmem:[#allocation2 + $0xa0] sm:$0xff] %vm95_vm2, %v1798_v4  ;;  %117 = vst.msk [vmem:[#allocation2 + $0xa8] sm:$0xff] %vm95_vm2, %v1798_v4 }
  0x30   :  { %236 = vmax.xlane.f32.xlu1 %v235_v47  ;;  %118 = vst.msk [vmem:[#allocation2 + $0xb0] sm:$0xff] %vm95_vm2, %v1798_v4  ;;  %119 = vst.msk [vmem:[#allocation2 + $0xb8] sm:$0xff] %vm95_vm2, %v1798_v4 }
  0x31   :  { %120 = vst.msk [vmem:[#allocation2 + $0xc0] sm:$0xff] %vm95_vm2, %v1798_v4  ;;  %121 = vst.msk [vmem:[#allocation2 + $0xc8] sm:$0xff] %vm95_vm2, %v1798_v4 }
  0x32   :  { %122 = vst.msk [vmem:[#allocation2 + $0xd0] sm:$0xff] %vm95_vm2, %v1798_v4  ;;  %123 = vst.msk [vmem:[#allocation2 + $0xd8] sm:$0xff] %vm95_vm2, %v1798_v4 }
  0x33   :  { %287 = vmax.xlane.f32.xlu0 %v286_v50  ;;  %124 = vst.msk [vmem:[#allocation2 + $0xe0] sm:$0xff] %vm95_vm2, %v1798_v4  ;;  %125 = vst.msk [vmem:[#allocation2 + $0xe8] sm:$0xff] %vm95_vm2, %v1798_v4 }
  0x34   :  { %290 = vmax.xlane.f32.xlu1 %v289_v51  ;;  %126 = vst.msk [vmem:[#allocation2 + $0xf0] sm:$0xff] %vm95_vm2, %v1798_v4  ;;  %127 = vst.msk [vmem:[#allocation2 + $0xf8] sm:$0xff] %vm95_vm2, %v1798_v4 }
  0x37   :  { %239 = vmax.xlane.f32.xlu0 %v238_v54 }
  0x38   :  { %242 = vmax.xlane.f32.xlu1 %v241_v55  ;;  %v3467_v55 = vmov 1.0|1.0  }
  0x3b   :  { %293 = vmax.xlane.f32.xlu0 %v292_v58 }
  0x3c   :  { %296 = vmax.xlane.f32.xlu1 %v295_v59 }
  0x3f   :  { %245 = vmax.xlane.f32.xlu0 %v244_v62 }
  0x40   :  { %248 = vmax.xlane.f32.xlu1 %v247_v63 }
  0x90   :  { %v2145_v19 = vpop.xlane.xlu0 %251 }
  0x91   :  { %3522 = vst [vmem:[#allocation6_spill] sm:$0xff] %v2145_v19  ;;  %v2147_v22 = vpop.xlane.xlu1 %203  ;;  %vm314_vm4 = vcmp.eq.f32.partialorder %v1820_v0, %v2145_v19  ;;  %vm954_vm5 = vcmp.lt.f32.partialorder %v2141_v15, %v2145_v19  ;;  %vm986_vm6 = vcmp.lt.f32.partialorder %v2145_v19, %v2143_v18 }
  0x92   :  { %3523 = vst [vmem:[#allocation7_spill] sm:$0xff] %v2147_v22  ;;  %v346_v23 = vsel %vm314_vm4, %v2137_v7, 16  ;;  %vm938_vm7 = vcmp.lt.f32.partialorder %v2141_v15, %v2147_v22  ;;  %vm970_vm8 = vcmp.lt.f32.partialorder %v2147_v22, %v2143_v18  ;;  %vm298_vm9 = vcmp.eq.f32.partialorder %v1825_v1, %v2147_v22  ;;  %vm2171_vm10 = vmand %vm954_vm5, %vm986_vm6 }
  0x93   :  { %v2163_v26 = vsel %vm201_vm0, %v346_v23, 2147483647  ;;  %v330_v0 = vsel %vm298_vm9, %v2137_v7, 16  ;;  %vm2193_vm14 = vmand %vm938_vm7, %vm970_vm8 }
  0x94   :  { %v2166_v27 = vpop.xlane.xlu0 %254  ;;  %v604_v31 = vshra.s32 %v2163_v26, 16  ;;  %v2176_v35 = vsel %vm201_vm0, %v330_v0, 2147483647 }
  0x95   :  { %3524 = vst [vmem:[#allocation8_spill] sm:$0xff] %v2166_v27  ;;  %v2168_v30 = vpop.xlane.xlu1 %206  ;;  %v2180_v1 = vpack.c.bf16 %v2166_v27, %v2145_v19  ;;  %vm955_vm12 = vcmp.lt.f32.partialorder %v2141_v15, %v2166_v27  ;;  %vm987_vm13 = vcmp.lt.f32.partialorder %v2166_v27, %v2143_v18  ;;  %vm315_vm3 = vcmp.eq.f32.partialorder %v1830_v2, %v2166_v27 }
  0x96   :  { %3525 = vst [vmem:[#allocation9_spill] sm:$0xff] %v2168_v30  ;;  %v2184_v38 = vpack.c.bf16 %v2168_v30, %v2147_v22  ;;  %v2197_v42 = vcvt.s32.f32 %v604_v31  ;;  %vm1019_vm15 = vmand %vm955_vm12, %vm987_vm13  ;;  %vm939_vm1 = vcmp.lt.f32.partialorder %v2141_v15, %v2168_v30  ;;  %vm971_vm2 = vcmp.lt.f32.partialorder %v2168_v30, %v2143_v18 }
  0x97   :  { %v3463_v43 = vunpack.c.h.bf16 %v2180_v1  ;;  %vm1650_vm4 = vmpackc.low %vm1019_vm15, %vm2171_vm10  ;;  %v347_v47 = vsel %vm315_vm3, %v2137_v7, 16  ;;  %v364_v50 = vshra.s32 %v2176_v35, 16  ;;  %vm299_vm6 = vcmp.eq.f32.partialorder %v1839_v5, %v2168_v30 }
  0x98   :  { %v3462_v46 = vunpack.c.h.bf16 %v2184_v38  ;;  %v2211_v51 = vpop.xlane.xlu0 %257  ;;  %607 = vmin.xlane.f32.xlu0 %v2197_v42  ;;  %1666 = vmatprep.subr.msk.bf16.mxu0 %vm1650_vm4, %v3467_v55  ;;  %vm1003_vm5 = vmand %vm939_vm1, %vm971_vm2  ;;  %v2218_v2 = vsel %vm201_vm0, %v347_v47, 2147483647  ;;  %v331_v62 = vsel %vm299_vm6, %v2137_v7, 16 }
  0x99   :  { %3530 = vst [vmem:[#allocation10_spill] sm:$0xff] %v2211_v51  ;;  %v2213_v54 = vpop.xlane.xlu1 %260  ;;  %vm1634_vm7 = vmpackc.low %vm1003_vm5, %vm2193_vm14  ;;  %v619_v59 = vshra.s32 %v2218_v2, 16  ;;  %v2236_v5 = vcvt.s32.f32 %v364_v50  ;;  %vm316_vm8 = vcmp.eq.f32.partialorder %v1848_v8, %v2211_v51  ;;  %vm956_vm9 = vcmp.lt.f32.partialorder %v2141_v15, %v2211_v51 }
  0x9a   :  { %3531 = vst [vmem:[#allocation11_spill] sm:$0xff] %v2213_v54  ;;  %v2224_v58 = vpack.c.bf16 %v2213_v54, %v2211_v51  ;;  %1180 = vst.msk [vmem:[#allocation2 + $0x88] sm:$0xff] %vm1162_vm11, %v3463_v43  ;;  %1667 = vmatpush3.bf16.msk.msra.mxu0 %vm1634_vm7, %v3467_v55  ;;  %v2247_v6 = vsel %vm201_vm0, %v331_v62, 2147483647  ;;  %v348_v10 = vsel %vm316_vm8, %v2137_v7, 16  ;;  %vm957_vm10 = vcmp.lt.f32.partialorder %v2141_v15, %v2213_v54 }
  0x9b   :  { %1164 = vst.msk [vmem:[#allocation2 + $0x8] sm:$0xff] %vm1162_vm11, %v3462_v46  ;;  %v2244_v4 = vcvt.s32.f32 %v619_v59  ;;  %v379_v8 = vshra.s32 %v2247_v6, 16  ;;  %v2257_v23 = vsel %vm201_vm0, %v348_v10, 2147483647  ;;  %vm988_vm12 = vcmp.lt.f32.partialorder %v2211_v51, %v2143_v18 }
  0x9c   :  { %v3461_v63 = vunpack.c.h.bf16 %v2224_v58  ;;  %v2250_v11 = vpop.xlane.xlu0 %209  ;;  %367 = vmin.xlane.f32.xlu0 %v2236_v5  ;;  %v634_v31 = vshra.s32 %v2257_v23, 16  ;;  %vm989_vm13 = vcmp.lt.f32.partialorder %v2213_v54, %v2143_v18  ;;  %vm1020_vm14 = vmand %vm956_vm9, %vm988_vm12  ;;  %vm317_vm1 = vcmp.eq.f32.partialorder %v1853_v9, %v2213_v54 }
  0x9d   :  { %3532 = vst [vmem:[#allocation12_spill] sm:$0xff] %v2250_v11  ;;  %v2252_v14 = vpop.xlane.xlu1 %212  ;;  %622 = vmin.xlane.f32.xlu1 %v2244_v4  ;;  %v2277_v34 = vcvt.s32.f32 %v379_v8  ;;  %vm1021_vm15 = vmand %vm957_vm10, %vm989_vm13  ;;  %vm300_vm2 = vcmp.eq.f32.partialorder %v1862_v12, %v2250_v11  ;;  %vm940_vm3 = vcmp.lt.f32.partialorder %v2141_v15, %v2250_v11  ;;  %v349_v50 = vsel %vm317_vm1, %v2137_v7, 16 }
  0x9e   :  { %3533 = vst [vmem:[#allocation13_spill] sm:$0xff] %v2252_v14  ;;  %v2265_v0 = vpack.c.bf16 %v2252_v14, %v2250_v11  ;;  %1182 = vst.msk [vmem:[#allocation2 + $0x98] sm:$0xff] %vm1162_vm11, %v3461_v63  ;;  %v2286_v47 = vcvt.s32.f32 %v634_v31  ;;  %v332_v59 = vsel %vm300_vm2, %v2137_v7, 16  ;;  %v2296_v9 = vsel %vm201_vm0, %v349_v50, 2147483647 }
  0x9f   :  { %vm1652_vm4 = vmpackc.low %vm1021_vm15, %vm1020_vm14  ;;  %v2299_v12 = vsel %vm201_vm0, %v332_v59, 2147483647  ;;  %vm941_vm5 = vcmp.lt.f32.partialorder %v2141_v15, %v2252_v14  ;;  %vm972_vm6 = vcmp.lt.f32.partialorder %v2250_v11, %v2143_v18  ;;  %v649_v31 = vshra.s32 %v2296_v9, 16 }
  0xa0   :  { %v3464_v39 = vunpack.c.h.bf16 %v2265_v0  ;;  %v2290_v62 = vpop.xlane.xlu0 %263  ;;  %1668 = vmatprep.subr.msk.bf16.mxu0 %vm1652_vm4, %v3467_v55  ;;  %637 = vmin.xlane.f32.xlu0 %v2286_v47  ;;  %v394_v50 = vshra.s32 %v2299_v12, 16  ;;  %vm2316_vm7 = vmand %vm940_vm3, %vm972_vm6  ;;  %vm973_vm8 = vcmp.lt.f32.partialorder %v2252_v14, %v2143_v18  ;;  %vm301_vm9 = vcmp.eq.f32.partialorder %v1867_v13, %v2252_v14 }
  0xa1   :  { %3534 = vst [vmem:[#allocation14_spill] sm:$0xff] %v2290_v62  ;;  %v2292_v10 = vpop.xlane.xlu1 %266  ;;  %382 = vmin.xlane.f32.xlu1 %v2277_v34  ;;  %vm318_vm10 = vcmp.eq.f32.partialorder %v1876_v16, %v2290_v62  ;;  %vm958_vm12 = vcmp.lt.f32.partialorder %v2141_v15, %v2290_v62  ;;  %v2332_v46 = vcvt.s32.f32 %v649_v31  ;;  %vm2339_vm13 = vmand %vm941_vm5, %vm973_vm8  ;;  %v333_v13 = vsel %vm301_vm9, %v2137_v7, 16 }
  0xa2   :  { %3535 = vst [vmem:[#allocation15_spill] sm:$0xff] %v2292_v10  ;;  %v2307_v8 = vpack.c.bf16 %v2292_v10, %v2290_v62  ;;  %1166 = vst.msk [vmem:[#allocation2 + $0x18] sm:$0xff] %vm1162_vm11, %v3464_v39  ;;  %v2334_v43 = vcvt.s32.f32 %v394_v50  ;;  %v2353_v31 = vsel %vm201_vm0, %v333_v13, 2147483647  ;;  %v350_v50 = vsel %vm318_vm10, %v2137_v7, 16 }
  0xa3   :  { %vm1636_vm14 = vmpackc.low %vm2339_vm13, %vm2316_vm7  ;;  %vm959_vm15 = vcmp.lt.f32.partialorder %v2141_v15, %v2292_v10  ;;  %vm990_vm1 = vcmp.lt.f32.partialorder %v2290_v62, %v2143_v18  ;;  %v409_v39 = vshra.s32 %v2353_v31, 16  ;;  %v2368_v59 = vsel %vm201_vm0, %v350_v50, 2147483647 }
  0xa4   :  { %v3472_v63 = vunpack.c.h.bf16 %v2307_v8  ;;  %v2344_v3 = vpop.xlane.xlu0 %215  ;;  %397 = vmin.xlane.f32.xlu0 %v2334_v43  ;;  %vm2373_vm2 = vmand %vm958_vm12, %vm990_vm1  ;;  %v3544_v11 = vmov 1.0|1.0   ;;  %v664_v14 = vshra.s32 %v2368_v59, 16  ;;  %vm991_vm3 = vcmp.lt.f32.partialorder %v2292_v10, %v2143_v18 }
  0xa5   :  { %3540 = vst [vmem:[#allocation16_spill] sm:$0xff] %v2344_v3  ;;  %v2346_v16 = vpop.xlane.xlu1 %218  ;;  %652 = vmin.xlane.f32.xlu1 %v2332_v46  ;;  %1669 = vmatpush3.bf16.msk.msra.mxu0 %vm1636_vm14, %v3544_v11  ;;  %vm319_vm4 = vcmp.eq.f32.partialorder %v1881_v17, %v2292_v10  ;;  %vm302_vm5 = vcmp.eq.f32.partialorder %v1890_v20, %v2344_v3  ;;  %v2389_v62 = vcvt.s32.f32 %v409_v39  ;;  %vm1023_vm6 = vmand %vm959_vm15, %vm991_vm3 }
  0xa6   :  { %3541 = vst [vmem:[#allocation17_spill] sm:$0xff] %v2346_v16  ;;  %v2362_v55 = vpack.c.bf16 %v2346_v16, %v2344_v3  ;;  %1184 = vst.msk [vmem:[#allocation2 + $0xa8] sm:$0xff] %vm1162_vm11, %v3472_v63  ;;  %v351_v63 = vsel %vm319_vm4, %v2137_v7, 16  ;;  %v334_v51 = vsel %vm302_vm5, %v2137_v7, 16  ;;  %v2400_v17 = vcvt.s32.f32 %v664_v14 }
  0xa7   :  { %vm1654_vm7 = vmpackc.low %vm1023_vm6, %vm2373_vm2  ;;  %v2405_v20 = vsel %vm201_vm0, %v351_v63, 2147483647  ;;  %v2408_v39 = vsel %vm201_vm0, %v334_v51, 2147483647  ;;  %vm942_vm8 = vcmp.lt.f32.partialorder %v2141_v15, %v2344_v3  ;;  %vm943_vm9 = vcmp.lt.f32.partialorder %v2141_v15, %v2346_v16 }
  0xa8   :  { %v2396_v54 = vpop.xlane.xlu0 %269  ;;  %3547 = vst [vmem:[#allocation20_spill] sm:$0xff] %v2400_v17  ;;  %1670 = vmatprep.subr.msk.bf16.mxu0 %vm1654_vm7, %v3544_v11  ;;  %v679_v14 = vshra.s32 %v2405_v20, 16  ;;  %v424_v13 = vshra.s32 %v2408_v39, 16  ;;  %v3548_v63 = vunpack.c.h.bf16 %v2362_v55  ;;  %667 = vmin.xlane.f32.xlu0 %v2400_v17  ;;  %vm974_vm10 = vcmp.lt.f32.partialorder %v2344_v3, %v2143_v18 }
  0xa9   :  { %3545 = vst [vmem:[#allocation18_spill] sm:$0xff] %v2396_v54  ;;  %v2398_v22 = vpop.xlane.xlu1 %272  ;;  %412 = vmin.xlane.f32.xlu1 %v2389_v62  ;;  %vm975_vm12 = vcmp.lt.f32.partialorder %v2346_v16, %v2143_v18  ;;  %vm303_vm13 = vcmp.eq.f32.partialorder %v1895_v21, %v2346_v16  ;;  %vm2440_vm14 = vmand %vm942_vm8, %vm974_vm10  ;;  %vm320_vm1 = vcmp.eq.f32.partialorder %v1904_v24, %v2396_v54 }
  0xaa   :  { %3546 = vst [vmem:[#allocation19_spill] sm:$0xff] %v2398_v22  ;;  %v2414_v50 = vpack.c.bf16 %v2398_v22, %v2396_v54  ;;  %1168 = vst.msk [vmem:[#allocation2 + $0x28] sm:$0xff] %vm1162_vm11, %v3548_v63  ;;  %v2433_v10 = vcvt.s32.f32 %v679_v14  ;;  %v2435_v30 = vcvt.s32.f32 %v424_v13  ;;  %v335_v19 = vsel %vm303_vm13, %v2137_v7, 16 }
  0xab   :  { %vm1007_vm15 = vmand %vm943_vm9, %vm975_vm12  ;;  %v2450_v21 = vsel %vm201_vm0, %v335_v19, 2147483647  ;;  %vm960_vm2 = vcmp.lt.f32.partialorder %v2141_v15, %v2396_v54  ;;  %v352_v19 = vsel %vm320_vm1, %v2137_v7, 16  ;;  %vm961_vm4 = vcmp.lt.f32.partialorder %v2141_v15, %v2398_v22 }
  0xac   :  { %v3482_v51 = vunpack.c.h.bf16 %v2414_v50  ;;  %3549 = vst [vmem:[#allocation21_spill] sm:$0xff] %v2433_v10  ;;  %3550 = vst [vmem:[#allocation22_spill] sm:$0xff] %v2435_v30  ;;  %v2445_v27 = vpop.xlane.xlu0 %221  ;;  %v439_v13 = vshra.s32 %v2450_v21, 16  ;;  %427 = vmin.xlane.f32.xlu0 %v2435_v30  ;;  %v2473_v24 = vsel %vm201_vm0, %v352_v19, 2147483647  ;;  %vm992_vm5 = vcmp.lt.f32.partialorder %v2396_v54, %v2143_v18 }
  0xad   :  { %3553 = vst [vmem:[#allocation23_spill] sm:$0xff] %v2445_v27  ;;  %v2447_v17 = vpop.xlane.xlu1 %224  ;;  %682 = vmin.xlane.f32.xlu1 %v2433_v10  ;;  %vm1638_vm3 = vmpackc.low %vm1007_vm15, %vm2440_vm14  ;;  %vm993_vm6 = vcmp.lt.f32.partialorder %v2398_v22, %v2143_v18  ;;  %vm321_vm7 = vcmp.eq.f32.partialorder %v1909_v25, %v2398_v22  ;;  %vm304_vm10 = vcmp.eq.f32.partialorder %v1918_v28, %v2445_v27 }
  0xae   :  { %3554 = vst [vmem:[#allocation24_spill] sm:$0xff] %v2447_v17  ;;  %v2458_v14 = vpack.c.bf16 %v2447_v17, %v2445_v27  ;;  %1186 = vst.msk [vmem:[#allocation2 + $0xb8] sm:$0xff] %vm1162_vm11, %v3482_v51  ;;  %1671 = vmatpush3.bf16.msk.msra.mxu0 %vm1638_vm3, %v3544_v11  ;;  %v2482_v3 = vcvt.s32.f32 %v439_v13  ;;  %v694_v51 = vshra.s32 %v2473_v24, 16  ;;  %v353_v16 = vsel %vm321_vm7, %v2137_v7, 16 }
  0xaf   :  { %vm2488_vm8 = vmand %vm960_vm2, %vm992_vm5  ;;  %v2501_v25 = vsel %vm201_vm0, %v353_v16, 2147483647  ;;  %vm944_vm12 = vcmp.lt.f32.partialorder %v2141_v15, %v2445_v27  ;;  %vm945_vm14 = vcmp.lt.f32.partialorder %v2141_v15, %v2447_v17  ;;  %v336_v54 = vsel %vm304_vm10, %v2137_v7, 16 }
  0xb0   :  { %3555 = vst [vmem:[#allocation25_spill] sm:$0xff] %v2482_v3  ;;  %v2493_v30 = vpop.xlane.xlu0 %275  ;;  %vm1025_vm9 = vmand %vm961_vm4, %vm993_vm6  ;;  %v2512_v63 = vcvt.s32.f32 %v694_v51  ;;  %v709_v16 = vshra.s32 %v2501_v25, 16  ;;  %v3561_v28 = vunpack.c.h.bf16 %v2458_v14  ;;  %vm976_vm15 = vcmp.lt.f32.partialorder %v2445_v27, %v2143_v18 }
  0xb1   :  { %v2495_v10 = vpop.xlane.xlu1 %278  ;;  %3559 = vst [vmem:[#allocation27_spill] sm:$0xff] %v2501_v25  ;;  %442 = vmin.xlane.f32.xlu1 %v2482_v3  ;;  %vm1656_vm13 = vmpackc.low %vm1025_vm9, %vm2488_vm8  ;;  %vm977_vm1 = vcmp.lt.f32.partialorder %v2447_v17, %v2143_v18  ;;  %vm305_vm2 = vcmp.eq.f32.partialorder %v1923_v29, %v2447_v17  ;;  %vm322_vm5 = vcmp.eq.f32.partialorder %v1932_v32, %v2493_v30 }
  0xb2   :  { %3558 = vst [vmem:[#allocation26_spill] sm:$0xff] %v2495_v10  ;;  %v2509_v13 = vpack.c.bf16 %v2495_v10, %v2493_v30  ;;  %3560 = vst [vmem:[#allocation28_spill] sm:$0xff] %v2512_v63  ;;  %1672 = vmatprep.subr.msk.bf16.mxu0 %vm1656_vm13, %v3544_v11  ;;  %697 = vmin.xlane.f32.xlu0 %v2512_v63  ;;  %v2532_v19 = vcvt.s32.f32 %v709_v16  ;;  %v337_v3 = vsel %vm305_vm2, %v2137_v7, 16  ;;  %v354_v17 = vsel %vm322_vm5, %v2137_v7, 16 }
  0xb3   :  { %1170 = vst.msk [vmem:[#allocation2 + $0x38] sm:$0xff] %vm1162_vm11, %v3561_v28  ;;  %v2535_v28 = vsel %vm201_vm0, %v336_v54, 2147483647  ;;  %vm2540_vm3 = vmand %vm944_vm12, %vm976_vm15  ;;  %v2550_v54 = vsel %vm201_vm0, %v337_v3, 2147483647  ;;  %vm962_vm6 = vcmp.lt.f32.partialorder %v2141_v15, %v2493_v30  ;;  %vm963_vm8 = vcmp.lt.f32.partialorder %v2141_v15, %v2495_v10 }
  0xb4   :  { %3562 = vst [vmem:[#allocation29_spill] sm:$0xff] %v2532_v19  ;;  %3563 = vst [vmem:[#allocation30_spill] sm:$0xff] %v2535_v28  ;;  %v228_v25 = vpop.xlane.xlu0 %227  ;;  %v454_v51 = vshra.s32 %v2535_v28, 16  ;;  %v469_v27 = vshra.s32 %v2550_v54, 16  ;;  %v3567_v28 = vunpack.c.h.bf16 %v2509_v13  ;;  %v2568_v32 = vsel %vm201_vm0, %v354_v17, 2147483647 }
  0xb5   :  { %v231_v29 = vpop.xlane.xlu1 %230  ;;  %vm1009_vm4 = vmand %vm945_vm14, %vm977_vm1  ;;  %3566 = vst [vmem:[#allocation31_spill] sm:$0xff] %v2550_v54  ;;  %712 = vmin.xlane.f32.xlu1 %v2532_v19  ;;  %vm994_vm9 = vcmp.lt.f32.partialorder %v2493_v30, %v2143_v18  ;;  %v724_v63 = vshra.s32 %v2568_v32, 16  ;;  %vm995_vm12 = vcmp.lt.f32.partialorder %v2495_v10, %v2143_v18  ;;  %vm323_vm13 = vcmp.eq.f32.partialorder %v1937_v33, %v2495_v10 }
  0xb6   :  { %v1118_v16 = vpack.c.bf16 %v231_v29, %v228_v25  ;;  %vm1640_vm7 = vmpackc.low %vm1009_vm4, %vm2540_vm3  ;;  %1188 = vst.msk [vmem:[#allocation2 + $0xc8] sm:$0xff] %vm1162_vm11, %v3567_v28  ;;  %v2564_v3 = vcvt.s32.f32 %v454_v51  ;;  %v2574_v54 = vcvt.s32.f32 %v469_v27  ;;  %vm306_vm14 = vcmp.eq.f32.partialorder %v1946_v36, %v228_v25 }
  0xb7   :  { %1673 = vmatpush3.bf16.msk.msra.mxu0 %vm1640_vm7, %v3544_v11  ;;  %3569 = vst [vmem:[#allocation33_spill] sm:$0xff] %v2568_v32  ;;  %vm2580_vm10 = vmand %vm962_vm6, %vm994_vm9  ;;  %vm946_vm15 = vcmp.lt.f32.partialorder %v2141_v15, %v228_v25  ;;  %v355_v33 = vsel %vm323_vm13, %v2137_v7, 16  ;;  %v338_v36 = vsel %vm306_vm14, %v2137_v7, 16  ;;  %vm947_vm3 = vcmp.lt.f32.partialorder %v2141_v15, %v231_v29 }
  0xb8   :  { %3568 = vst [vmem:[#allocation32_spill] sm:$0xff] %v2564_v3  ;;  %v1138_v22 = vunpack.c.l.bf16 %v1118_v16  ;;  %v1139_v19 = vunpack.c.h.bf16 %v1118_v16  ;;  %3570 = vst [vmem:[#allocation34_spill] sm:$0xff] %v2574_v54  ;;  %457 = vmin.xlane.f32.xlu0 %v2564_v3  ;;  %v282_v17 = vpop.xlane.xlu0 %281  ;;  %v2599_v3 = vcvt.s32.f32 %v724_v63  ;;  %vm978_vm4 = vcmp.lt.f32.partialorder %v228_v25, %v2143_v18 }
  0xb9   :  { %v2585_v28 = vpop.xlane.xlu1 %284  ;;  %472 = vmin.xlane.f32.xlu1 %v2574_v54  ;;  %vm1027_vm1 = vmand %vm963_vm8, %vm995_vm12  ;;  %vm979_vm6 = vcmp.lt.f32.partialorder %v231_v29, %v2143_v18  ;;  %vm307_vm7 = vcmp.eq.f32.partialorder %v1951_v37, %v231_v29  ;;  %vm964_vm12 = vcmp.lt.f32.partialorder %v2141_v15, %v282_v17  ;;  %vm996_vm14 = vcmp.lt.f32.partialorder %v282_v17, %v2143_v18 }
  0xba   :  { %v2593_v27 = vsub.f32 %v228_v25, %v1138_v22  ;;  %v2595_v16 = vsub.f32 %v231_v29, %v1139_v19  ;;  %v1127_v32 = vpack.c.bf16 %v2585_v28, %v282_v17  ;;  %3575 = vst [vmem:[#allocation37_spill] sm:$0xff] %v2599_v3  ;;  %1171 = vst.msk [vmem:[#allocation2 + $0x40] sm:$0xff] %vm1162_vm11, %v1138_v22  ;;  %v339_v54 = vsel %vm307_vm7, %v2137_v7, 16 }
  0xbb   :  { %1172 = vst.msk [vmem:[#allocation2 + $0x48] sm:$0xff] %vm1162_vm11, %v1139_v19  ;;  %vm1658_vm2 = vmpackc.low %vm1027_vm1, %vm2580_vm10  ;;  %v2617_v19 = vsel %vm201_vm0, %v338_v36, 2147483647  ;;  %vm324_vm10 = vcmp.eq.f32.partialorder %v1960_v40, %v282_v17  ;;  %vm965_vm13 = vcmp.lt.f32.partialorder %v2141_v15, %v2585_v28  ;;  %vm997_vm1 = vcmp.lt.f32.partialorder %v2585_v28, %v2143_v18 }
  0xbc   :  { %3573 = vst [vmem:[#allocation35_spill] sm:$0xff] %v2593_v27  ;;  %3574 = vst [vmem:[#allocation36_spill] sm:$0xff] %v2595_v16  ;;  %v1156_v63 = vunpack.c.l.bf16 %v1127_v32  ;;  %v1157_v16 = vunpack.c.h.bf16 %v1127_v32  ;;  %1674 = vmatprep.subr.msk.bf16.mxu0 %vm1658_vm2, %v3544_v11  ;;  %v2614_v27 = vsel %vm201_vm0, %v355_v33, 2147483647  ;;  %727 = vmin.xlane.f32.xlu0 %v2599_v3  ;;  %v2626_v51 = vpop.xlane.xlu0 %233  ;;  %v484_v33 = vshra.s32 %v2617_v19, 16 }
  0xbd   :  { %3576 = vst [vmem:[#allocation38_spill] sm:$0xff] %v2617_v19  ;;  %vm2621_vm5 = vmand %vm946_vm15, %vm978_vm4  ;;  %v2628_v10 = vpop.xlane.xlu1 %236  ;;  %v739_v32 = vshra.s32 %v2614_v27, 16  ;;  %vm325_vm2 = vcmp.eq.f32.partialorder %v1965_v41, %v2585_v28 }
  0xbe   :  { %v2634_v36 = vsub.f32 %v282_v17, %v1156_v63  ;;  %v2637_v25 = vsub.f32 %v2585_v28, %v1157_v16  ;;  %v1119_v3 = vpack.c.bf16 %v2628_v10, %v2626_v51  ;;  %vm1011_vm8 = vmand %vm947_vm3, %vm979_vm6  ;;  %1189 = vst.msk [vmem:[#allocation2 + $0xd0] sm:$0xff] %vm1162_vm11, %v1156_v63  ;;  %v2648_v37 = vcvt.s32.f32 %v484_v33 }
  0xbf   :  { %1190 = vst.msk [vmem:[#allocation2 + $0xd8] sm:$0xff] %vm1162_vm11, %v1157_v16  ;;  %v2646_v19 = vcvt.s32.f32 %v739_v32  ;;  %vm1642_vm9 = vmpackc.low %vm1011_vm8, %vm2621_vm5  ;;  %v356_v16 = vsel %vm324_vm10, %v2137_v7, 16  ;;  %vm308_vm3 = vcmp.eq.f32.partialorder %v1974_v44, %v2626_v51  ;;  %vm948_vm6 = vcmp.lt.f32.partialorder %v2141_v15, %v2626_v51 }
  0xc0   :  { %3579 = vst [vmem:[#allocation39_spill] sm:$0xff] %v2634_v36  ;;  %3580 = vst [vmem:[#allocation40_spill] sm:$0xff] %v2637_v25  ;;  %v2653_v25 = vsel %vm201_vm0, %v339_v54, 2147483647  ;;  %v1140_v29 = vunpack.c.l.bf16 %v1119_v3  ;;  %v1141_v36 = vunpack.c.h.bf16 %v1119_v3  ;;  %1675 = vmatpush3.bf16.msk.msra.mxu0 %vm1642_vm9, %v3544_v11  ;;  %487 = vmin.xlane.f32.xlu0 %v2648_v37  ;;  %v2661_v32 = vpop.xlane.xlu0 %287  ;;  %v2666_v54 = vsel %vm201_vm0, %v356_v16, 2147483647 }
  0xc1   :  { %3581 = vst [vmem:[#allocation41_spill] sm:$0xff] %v2648_v37  ;;  %v499_v63 = vshra.s32 %v2653_v25, 16  ;;  %742 = vmin.xlane.f32.xlu1 %v2646_v19  ;;  %v2663_v22 = vpop.xlane.xlu1 %290  ;;  %vm2682_vm15 = vmand %vm964_vm12, %vm996_vm14  ;;  %v754_v17 = vshra.s32 %v2666_v54, 16  ;;  %vm949_vm7 = vcmp.lt.f32.partialorder %v2141_v15, %v2628_v10  ;;  %vm980_vm8 = vcmp.lt.f32.partialorder %v2626_v51, %v2143_v18 }
  0xc2   :  { %v2673_v40 = vsub.f32 %v2626_v51, %v1140_v29  ;;  %v2676_v3 = vsub.f32 %v2628_v10, %v1141_v36  ;;  %v1128_v33 = vpack.c.bf16 %v2663_v22, %v2661_v32  ;;  %1173 = vst.msk [vmem:[#allocation2 + $0x50] sm:$0xff] %vm1162_vm11, %v1140_v29  ;;  %1174 = vst.msk [vmem:[#allocation2 + $0x58] sm:$0xff] %vm1162_vm11, %v1141_v36  ;;  %v357_v29 = vsel %vm325_vm2, %v2137_v7, 16 }
  0xc3   :  { %v2680_v37 = vcvt.s32.f32 %v499_v63  ;;  %vm1029_vm4 = vmand %vm965_vm13, %vm997_vm1  ;;  %v340_v36 = vsel %vm308_vm3, %v2137_v7, 16  ;;  %vm981_vm9 = vcmp.lt.f32.partialorder %v2628_v10, %v2143_v18  ;;  %vm309_vm12 = vcmp.eq.f32.partialorder %v1979_v45, %v2628_v10 }
  0xc4   :  { %3582 = vst [vmem:[#allocation42_spill] sm:$0xff] %v2673_v40  ;;  %3583 = vst [vmem:[#allocation43_spill] sm:$0xff] %v2676_v3  ;;  %v1158_v63 = vunpack.c.l.bf16 %v1128_v33  ;;  %v1159_v3 = vunpack.c.h.bf16 %v1128_v33  ;;  %v2701_v40 = vcvt.s32.f32 %v754_v17  ;;  %v2705_v41 = vpop.xlane.xlu0 %239  ;;  %v2710_v33 = vsel %vm201_vm0, %v357_v29, 2147483647 }
  0xc5   :  { %3584 = vst [vmem:[#allocation44_spill] sm:$0xff] %v2680_v37  ;;  %502 = vmin.xlane.f32.xlu1 %v2680_v37  ;;  %vm1660_vm5 = vmpackc.low %vm1029_vm4, %vm2682_vm15  ;;  %v2707_v44 = vpop.xlane.xlu1 %242  ;;  %v2713_v28 = vsel %vm201_vm0, %v340_v36, 2147483647  ;;  %v769_v29 = vshra.s32 %v2710_v33, 16  ;;  %vm326_vm14 = vcmp.eq.f32.partialorder %v1988_v48, %v2661_v32  ;;  %vm966_vm15 = vcmp.lt.f32.partialorder %v2141_v15, %v2661_v32 }
  0xc6   :  { %3587 = vst [vmem:[#allocation45_spill] sm:$0xff] %v2701_v40  ;;  %3588 = vst [vmem:[#allocation46_spill] sm:$0xff] %v2710_v33  ;;  %v2718_v37 = vsub.f32 %v2661_v32, %v1158_v63  ;;  %v2721_v17 = vsub.f32 %v2663_v22, %v1159_v3  ;;  %1676 = vmatprep.subr.msk.bf16.mxu0 %vm1660_vm5, %v3544_v11  ;;  %v1120_v16 = vpack.c.bf16 %v2707_v44, %v2705_v41 }
  0xc7   :  { %3589 = vst [vmem:[#allocation47_spill] sm:$0xff] %v2713_v28  ;;  %1191 = vst.msk [vmem:[#allocation2 + $0xe0] sm:$0xff] %vm1162_vm11, %v1158_v63  ;;  %757 = vmin.xlane.f32.xlu0 %v2701_v40  ;;  %v514_v36 = vshra.s32 %v2713_v28, 16  ;;  %v2737_v33 = vcvt.s32.f32 %v769_v29  ;;  %v341_v29 = vsel %vm309_vm12, %v2137_v7, 16  ;;  %vm967_vm2 = vcmp.lt.f32.partialorder %v2141_v15, %v2663_v22 }
  0xc8   :  { %3590 = vst [vmem:[#allocation48_spill] sm:$0xff] %v2718_v37  ;;  %3591 = vst [vmem:[#allocation49_spill] sm:$0xff] %v2721_v17  ;;  %v1142_v17 = vunpack.c.l.bf16 %v1120_v16  ;;  %v1143_v37 = vunpack.c.h.bf16 %v1120_v16  ;;  %v2754_v28 = vpop.xlane.xlu0 %293  ;;  %v2777_v48 = vsel %vm201_vm0, %v341_v29, 2147483647  ;;  %vm998_vm3 = vcmp.lt.f32.partialorder %v2661_v32, %v2143_v18 }
  0xc9   :  { %1192 = vst.msk [vmem:[#allocation2 + $0xe8] sm:$0xff] %vm1162_vm11, %v1159_v3  ;;  %vm2742_vm10 = vmand %vm948_vm6, %vm980_vm8  ;;  %v2748_v63 = vcvt.s32.f32 %v514_v36  ;;  %v2756_v16 = vpop.xlane.xlu1 %296  ;;  %772 = vmin.xlane.f32.xlu1 %v2737_v33  ;;  %v529_v36 = vshra.s32 %v2777_v48, 16  ;;  %v358_v3 = vsel %vm326_vm14, %v2137_v7, 16  ;;  %vm999_vm4 = vcmp.lt.f32.partialorder %v2663_v22, %v2143_v18 }
  0xca   :  { %vm2750_vm13 = vmand %vm949_vm7, %vm981_vm9  ;;  %v2764_v45 = vsub.f32 %v2705_v41, %v1142_v17  ;;  %v2767_v10 = vsub.f32 %v2707_v44, %v1143_v37  ;;  %v1129_v51 = vpack.c.bf16 %v2756_v16, %v2754_v28  ;;  %1175 = vst.msk [vmem:[#allocation2 + $0x60] sm:$0xff] %vm1162_vm11, %v1142_v17  ;;  %v2790_v17 = vsel %vm201_vm0, %v358_v3, 2147483647 }
  0xcb   :  { %3594 = vst [vmem:[#allocation50_spill] sm:$0xff] %v2748_v63  ;;  %vm1644_vm1 = vmpackc.low %vm2750_vm13, %vm2742_vm10  ;;  %517 = vmin.xlane.f32.xlu0 %v2748_v63  ;;  %vm327_vm7 = vcmp.eq.f32.partialorder %v1993_v49, %v2663_v22  ;;  %vm310_vm8 = vcmp.eq.f32.partialorder %v2002_v52, %v2705_v41  ;;  %vm950_vm10 = vcmp.lt.f32.partialorder %v2141_v15, %v2705_v41 }
  0xcc   :  { %3597 = vst [vmem:[#allocation51_spill] sm:$0xff] %v2764_v45  ;;  %3598 = vst [vmem:[#allocation52_spill] sm:$0xff] %v2767_v10  ;;  %1677 = vmatpush3.bf16.msk.msra.mxu0 %vm1644_vm1, %v3544_v11  ;;  %v1160_v40 = vunpack.c.l.bf16 %v1129_v51  ;;  %v1161_v29 = vunpack.c.h.bf16 %v1129_v51  ;;  %v2801_v10 = vcvt.s32.f32 %v529_v36  ;;  %v784_v45 = vshra.s32 %v2790_v17, 16  ;;  %v2804_v63 = vpop.xlane.xlu0 %245 }
  0xcd   :  { %1176 = vst.msk [vmem:[#allocation2 + $0x68] sm:$0xff] %vm1162_vm11, %v1143_v37  ;;  %3599 = vst [vmem:[#allocation53_spill] sm:$0xff] %v2790_v17  ;;  %v2806_v51 = vpop.xlane.xlu1 %248  ;;  %v359_v17 = vsel %vm327_vm7, %v2137_v7, 16  ;;  %v342_v22 = vsel %vm310_vm8, %v2137_v7, 16  ;;  %vm951_vm12 = vcmp.lt.f32.partialorder %v2141_v15, %v2707_v44  ;;  %vm982_vm13 = vcmp.lt.f32.partialorder %v2705_v41, %v2143_v18 }
  0xce   :  { %vm2797_vm5 = vmand %vm966_vm15, %vm998_vm3  ;;  %3602 = vst [vmem:[#allocation54_spill] sm:$0xff] %v2804_v63  ;;  %v2813_v32 = vsub.f32 %v2754_v28, %v1160_v40  ;;  %v2816_v3 = vsub.f32 %v2756_v16, %v1161_v29  ;;  %v2822_v36 = vpack.c.bf16 %v2806_v51, %v2804_v63  ;;  %532 = vmin.xlane.f32.xlu1 %v2801_v10  ;;  %v2828_v49 = vcvt.s32.f32 %v784_v45 }
  0xcf   :  { %vm1031_vm6 = vmand %vm967_vm2, %vm999_vm4  ;;  %3603 = vst [vmem:[#allocation55_spill] sm:$0xff] %v2806_v51  ;;  %v2832_v52 = vsel %vm201_vm0, %v359_v17, 2147483647  ;;  %vm983_vm14 = vcmp.lt.f32.partialorder %v2707_v44, %v2143_v18  ;;  %vm311_vm1 = vcmp.eq.f32.partialorder %v2007_v53, %v2707_v44  ;;  %vm328_vm3 = vcmp.eq.f32.partialorder %v2016_v56, %v2754_v28 }
  0xd0   :  { %3604 = vst [vmem:[#allocation56_spill] sm:$0xff] %v2813_v32  ;;  %3605 = vst [vmem:[#allocation57_spill] sm:$0xff] %v2816_v3  ;;  %v3509_v37 = vunpack.c.l.bf16 %v2822_v36  ;;  %v2841_v3 = vsel %vm201_vm0, %v342_v22, 2147483647  ;;  %787 = vmin.xlane.f32.xlu0 %v2828_v49  ;;  %v3609_v22 = vunpack.c.h.bf16 %v2822_v36  ;;  %vm968_vm4 = vcmp.lt.f32.partialorder %v2141_v15, %v2754_v28  ;;  %v3627_v32 = vld [vmem:[#allocation47_spill] sm:$0xff] }
  0xd1   :  { %vm1662_vm9 = vmpackc.low %vm1031_vm6, %vm2797_vm5  ;;  %3606 = vst [vmem:[#allocation58_spill] sm:$0xff] %v2822_v36  ;;  %v544_v45 = vshra.s32 %v2841_v3, 16  ;;  %v360_v44 = vsel %vm328_vm3, %v2137_v7, 16  ;;  %vm969_vm6 = vcmp.lt.f32.partialorder %v2141_v15, %v2756_v16  ;;  %vm1000_vm7 = vcmp.lt.f32.partialorder %v2754_v28, %v2143_v18 }
  0xd2   :  { %1193 = vst.msk [vmem:[#allocation2 + $0xf0] sm:$0xff] %vm1162_vm11, %v1160_v40  ;;  %1194 = vst.msk [vmem:[#allocation2 + $0xf8] sm:$0xff] %vm1162_vm11, %v1161_v29  ;;  %1678 = vmatprep.subr.msk.bf16.mxu0 %vm1662_vm9, %v3544_v11  ;;  %v799_v29 = vshra.s32 %v2832_v52, 16  ;;  %v2887_v40 = vsel %vm201_vm0, %v360_v44, 2147483647  ;;  %vm1001_vm8 = vcmp.lt.f32.partialorder %v2756_v16, %v2143_v18  ;;  %vm985_vm3 = vcmp.lt.f32.partialorder %v2806_v51, %v2143_v18 }
  0xd3   :  { %vm2853_vm15 = vmand %vm950_vm10, %vm982_vm13  ;;  %1177 = vst.msk [vmem:[#allocation2 + $0x70] sm:$0xff] %vm1162_vm11, %v3509_v37  ;;  %v2865_v41 = vcvt.s32.f32 %v544_v45  ;;  %vm329_vm10 = vcmp.eq.f32.partialorder %v2021_v57, %v2756_v16  ;;  %v814_v45 = vshra.s32 %v2887_v40, 16  ;;  %vm312_vm13 = vcmp.eq.f32.partialorder %v2030_v60, %v2804_v63 }
  0xd4   :  { %v2851_v17 = vcvt.s32.f32 %v799_v29  ;;  %1178 = vst.msk [vmem:[#allocation2 + $0x78] sm:$0xff] %vm1162_vm11, %v3609_v22  ;;  %vm1015_vm2 = vmand %vm951_vm12, %vm983_vm14  ;;  %v343_v29 = vsel %vm311_vm1, %v2137_v7, 16  ;;  %v361_v28 = vsel %vm329_vm10, %v2137_v7, 16  ;;  %vm952_vm14 = vcmp.lt.f32.partialorder %v2141_v15, %v2804_v63 }
  0xd5   :  { %vm1646_vm5 = vmpackc.low %vm1015_vm2, %vm2853_vm15  ;;  %v2876_v53 = vsel %vm201_vm0, %v343_v29, 2147483647  ;;  %547 = vmin.xlane.f32.xlu0 %v2865_v41  ;;  %v2902_v29 = vsel %vm201_vm0, %v361_v28, 2147483647  ;;  %v344_v44 = vsel %vm312_vm13, %v2137_v7, 16  ;;  %vm953_vm1 = vcmp.lt.f32.partialorder %v2141_v15, %v2806_v51 }
  0xd6   :  { %802 = vmin.xlane.f32.xlu1 %v2851_v17  ;;  %1679 = vmatpush3.bf16.msk.msra.mxu0 %vm1646_vm5, %v3544_v11  ;;  %v559_v56 = vshra.s32 %v2876_v53, 16  ;;  %vm1032_vm9 = vmand %vm968_vm4, %vm1000_vm7  ;;  %v2907_v57 = vcvt.s32.f32 %v814_v45  ;;  %v829_v60 = vshra.s32 %v2902_v29, 16  ;;  %v2912_v16 = vsel %vm201_vm0, %v344_v44, 2147483647 }
  0xd7   :  { %vm1033_vm12 = vmand %vm969_vm6, %vm1001_vm8  ;;  %vm984_vm2 = vcmp.lt.f32.partialorder %v2804_v63, %v2143_v18  ;;  %vm313_vm5 = vcmp.eq.f32.partialorder %v2035_v61, %v2806_v51  ;;  %v3517_v37 = vunpack.c.l.bf16 %v2414_v50 }
  0xd8   :  { %v2899_v22 = vcvt.s32.f32 %v559_v56  ;;  %vm1664_vm15 = vmpackc.low %vm1033_vm12, %vm1032_vm9  ;;  %v574_v56 = vshra.s32 %v2912_v16, 16  ;;  %v2923_v15 = vcvt.s32.f32 %v829_v60  ;;  %v345_v45 = vsel %vm313_vm5, %v2137_v7, 16 }
  0xd9   :  { %1680 = vmatprep.subr.msk.bf16.mxu0 %vm1664_vm15, %v3544_v11  ;;  %vm1016_vm4 = vmand %vm952_vm14, %vm984_vm2  ;;  %817 = vmin.xlane.f32.xlu0 %v2907_v57  ;;  %v2929_v44 = vsel %vm201_vm0, %v345_v45, 2147483647  ;;  %v3510_v7 = vunpack.c.l.bf16 %v2180_v1  ;;  %v3511_v60 = vunpack.c.l.bf16 %v2184_v38  ;;  %v3514_v45 = vunpack.c.l.bf16 %v2307_v8  ;;  %1185 = vst.msk [vmem:[#allocation2 + $0xb0] sm:$0xff] %vm1162_vm11, %v3517_v37 }
  0xda   :  { %562 = vmin.xlane.f32.xlu1 %v2899_v22  ;;  %vm1017_vm6 = vmand %vm953_vm1, %vm985_vm3  ;;  %v2926_v28 = vcvt.s32.f32 %v574_v56  ;;  %v589_v18 = vshra.s32 %v2929_v44, 16  ;;  %v3513_v56 = vunpack.c.l.bf16 %v2224_v58  ;;  %v618_v37 = vand.u32 65535, %v2218_v2 }
  0xdb   :  { %vm1648_vm7 = vmpackc.low %vm1017_vm6, %vm1016_vm4  ;;  %1179 = vst.msk [vmem:[#allocation2 + $0x80] sm:$0xff] %vm1162_vm11, %v3510_v7  ;;  %v3519_v7 = vunpack.c.l.bf16 %v2458_v14 }
  0xdc   :  { %1681 = vmatpush3.bf16.msk.msra.mxu0 %vm1648_vm7, %v3544_v11  ;;  %v2935_v61 = vcvt.s32.f32 %v589_v18  ;;  %1163 = vst.msk [vmem:[#allocation2] sm:$0xff] %vm1162_vm11, %v3511_v60  ;;  %v3512_v11 = vunpack.c.l.bf16 %v2265_v0  ;;  %1181 = vst.msk [vmem:[#allocation2 + $0x90] sm:$0xff] %vm1162_vm11, %v3513_v56  ;;  %v3516_v18 = vunpack.c.l.bf16 %v2362_v55  ;;  %v1154_v60 = vunpack.c.l.bf16 %v2509_v13 }
  0xdd   :  { %577 = vmin.xlane.f32.xlu0 %v2926_v28  ;;  %1183 = vst.msk [vmem:[#allocation2 + $0xa0] sm:$0xff] %vm1162_vm11, %v3514_v45  ;;  %1169 = vst.msk [vmem:[#allocation2 + $0x30] sm:$0xff] %vm1162_vm11, %v3519_v7  ;;  %v603_v56 = vand.u32 65535, %v2163_v26  ;;  %v378_v26 = vand.u32 65535, %v2247_v6 }
  0xde   :  { %832 = vmin.xlane.f32.xlu1 %v2923_v15  ;;  %1165 = vst.msk [vmem:[#allocation2 + $0x10] sm:$0xff] %vm1162_vm11, %v3512_v11  ;;  %1167 = vst.msk [vmem:[#allocation2 + $0x20] sm:$0xff] %vm1162_vm11, %v3516_v18  ;;  %v2972_v11 = vsub.f32 %v2493_v30, %v1154_v60  ;;  %v363_v18 = vand.u32 65535, %v2176_v35  ;;  %v633_v35 = vand.u32 65535, %v2257_v23 }
  0xdf   :  { %1187 = vst.msk [vmem:[#allocation2 + $0xc0] sm:$0xff] %vm1162_vm11, %v1154_v60  ;;  %v605_v51 = vcvt.s32.f32 %v603_v56  ;;  %v620_v60 = vcvt.s32.f32 %v618_v37  ;;  %v380_v56 = vcvt.s32.f32 %v378_v26 }
  0xe0   :  { %v365_v30 = vcvt.s32.f32 %v363_v18  ;;  %v635_v37 = vcvt.s32.f32 %v633_v35  ;;  %v648_v18 = vand.u32 65535, %v2296_v9  ;;  %v408_v9 = vand.u32 65535, %v2353_v31 }
  0xe1   :  { %v423_v31 = vand.u32 65535, %v2408_v39  ;;  %v3612_v39 = vld [vmem:[#allocation22_spill] sm:$0xff] }
  0xe2   :  { %592 = vmin.xlane.f32.xlu1 %v2935_v61 }
 0x125   :  { %v2976_v45 = vpop.xlane.xlu0 %607 }
 0x126   :  { %vm609_vm0 = vcmp.eq.f32.partialorder %v2197_v42, %v2976_v45 }
 0x127   :  { %v610_v63 = vsel %vm609_vm0, %v605_v51, inf }
 0x128   :  { %611 = vmin.xlane.f32.xlu0 %v610_v63 }
 0x129   :  { %v2982_v7 = vpop.xlane.xlu0 %367 }
 0x12a   :  { %v2984_v36 = vpop.xlane.xlu1 %622  ;;  %vm369_vm11 = vcmp.eq.f32.partialorder %v2236_v5, %v2982_v7  ;;  %v393_v5 = vand.u32 65535, %v2299_v12 }
 0x12b   :  { %vm624_vm8 = vcmp.eq.f32.partialorder %v2244_v4, %v2984_v36  ;;  %v370_v42 = vsel %vm369_vm11, %v365_v30, inf }
 0x12c   :  { %v625_v2 = vsel %vm624_vm8, %v620_v60, inf  ;;  %371 = vmin.xlane.f32.xlu0 %v370_v42  ;;  %v650_v60 = vcvt.s32.f32 %v648_v18  ;;  %v395_v26 = vcvt.s32.f32 %v393_v5  ;;  %v410_v42 = vcvt.s32.f32 %v408_v9 }
 0x12d   :  { %626 = vmin.xlane.f32.xlu1 %v625_v2  ;;  %v2994_v51 = vpop.xlane.xlu0 %637  ;;  %v678_v2 = vand.u32 65535, %v2405_v20  ;;  %v438_v20 = vand.u32 65535, %v2450_v21 }
 0x12e   :  { %v2992_v63 = vpop.xlane.xlu1 %382  ;;  %vm639_vm10 = vcmp.eq.f32.partialorder %v2286_v47, %v2994_v51 }
 0x12f   :  { %vm384_vm9 = vcmp.eq.f32.partialorder %v2277_v34, %v2992_v63  ;;  %v640_v6 = vsel %vm639_vm10, %v635_v37, inf  ;;  %v663_v34 = vand.u32 65535, %v2368_v59  ;;  %v3610_v59 = vld [vmem:[#allocation20_spill] sm:$0xff]  ;;  %v680_v5 = vcvt.s32.f32 %v678_v2 }
 0x130   :  { %v385_v4 = vsel %vm384_vm9, %v380_v56, inf  ;;  %641 = vmin.xlane.f32.xlu0 %v640_v6  ;;  %v3611_v6 = vld [vmem:[#allocation21_spill] sm:$0xff] }
 0x131   :  { %386 = vmin.xlane.f32.xlu1 %v385_v4  ;;  %v3004_v30 = vpop.xlane.xlu0 %397 }
 0x132   :  { %v3002_v23 = vpop.xlane.xlu1 %652  ;;  %vm399_vm13 = vcmp.eq.f32.partialorder %v2334_v43, %v3004_v30 }
 0x133   :  { %vm654_vm12 = vcmp.eq.f32.partialorder %v2332_v46, %v3002_v23  ;;  %v400_v12 = vsel %vm399_vm13, %v395_v26, inf  ;;  %v665_v46 = vcvt.s32.f32 %v663_v34  ;;  %v693_v26 = vand.u32 65535, %v2473_v24  ;;  %v3616_v24 = vld [vmem:[#allocation30_spill] sm:$0xff] }
 0x134   :  { %v655_v47 = vsel %vm654_vm12, %v650_v60, inf  ;;  %401 = vmin.xlane.f32.xlu0 %v400_v12  ;;  %v3613_v12 = vld [vmem:[#allocation27_spill] sm:$0xff] }
 0x135   :  { %656 = vmin.xlane.f32.xlu1 %v655_v47  ;;  %v3015_v56 = vpop.xlane.xlu0 %667  ;;  %v440_v47 = vcvt.s32.f32 %v438_v20  ;;  %v708_v21 = vand.u32 65535, %v3613_v12  ;;  %v3617_v20 = vld [vmem:[#allocation31_spill] sm:$0xff] }
 0x136   :  { %v3012_v35 = vpop.xlane.xlu1 %412  ;;  %vm669_vm15 = vcmp.eq.f32.partialorder %v3610_v59, %v3015_v56  ;;  %v453_v59 = vand.u32 65535, %v3616_v24 }
 0x137   :  { %vm414_vm14 = vcmp.eq.f32.partialorder %v2389_v62, %v3012_v35  ;;  %v670_v37 = vsel %vm669_vm15, %v665_v46, inf  ;;  %v425_v62 = vcvt.s32.f32 %v423_v31  ;;  %v695_v31 = vcvt.s32.f32 %v693_v26 }
 0x138   :  { %v415_v43 = vsel %vm414_vm14, %v410_v42, inf  ;;  %671 = vmin.xlane.f32.xlu0 %v670_v37  ;;  %v3614_v42 = vld [vmem:[#allocation25_spill] sm:$0xff]  ;;  %v455_v26 = vcvt.s32.f32 %v453_v59  ;;  %v738_v59 = vand.u32 65535, %v2614_v27 }
 0x139   :  { %416 = vmin.xlane.f32.xlu1 %v415_v43  ;;  %v3025_v4 = vpop.xlane.xlu0 %427  ;;  %v3615_v43 = vld [vmem:[#allocation28_spill] sm:$0xff]  ;;  %v3624_v27 = vld [vmem:[#allocation41_spill] sm:$0xff] }
 0x13a   :  { %v3022_v18 = vpop.xlane.xlu1 %682  ;;  %vm429_vm2 = vcmp.eq.f32.partialorder %v3612_v39, %v3025_v4 }
 0x13b   :  { %vm684_vm1 = vcmp.eq.f32.partialorder %v3611_v6, %v3022_v18  ;;  %v430_v9 = vsel %vm429_vm2, %v425_v62, inf  ;;  %v710_v6 = vcvt.s32.f32 %v708_v21  ;;  %v468_v62 = vand.u32 65535, %v3617_v20  ;;  %v3622_v20 = vld [vmem:[#allocation38_spill] sm:$0xff] }
 0x13c   :  { %v685_v60 = vsel %vm684_vm1, %v680_v5, inf  ;;  %431 = vmin.xlane.f32.xlu0 %v430_v9 }
 0x13d   :  { %686 = vmin.xlane.f32.xlu1 %v685_v60  ;;  %v3618_v60 = vld [vmem:[#allocation29_spill] sm:$0xff] }
 0x13e   :  { %v3032_v34 = vpop.xlane.xlu1 %442 }
 0x13f   :  { %vm444_vm3 = vcmp.eq.f32.partialorder %v3614_v42, %v3032_v34  ;;  %v3037_v2 = vpop.xlane.xlu0 %697  ;;  %v3620_v42 = vld [vmem:[#allocation32_spill] sm:$0xff] }
 0x140   :  { %v445_v46 = vsel %vm444_vm3, %v440_v47, inf  ;;  %vm699_vm4 = vcmp.eq.f32.partialorder %v3615_v43, %v3037_v2  ;;  %v3619_v47 = vld [vmem:[#allocation33_spill] sm:$0xff]  ;;  %v3621_v43 = vld [vmem:[#allocation34_spill] sm:$0xff] }
 0x141   :  { %446 = vmin.xlane.f32.xlu1 %v445_v46  ;;  %v700_v37 = vsel %vm699_vm4, %v695_v31, inf  ;;  %v723_v12 = vand.u32 65535, %v3619_v47  ;;  %v470_v31 = vcvt.s32.f32 %v468_v62 }
 0x142   :  { %v3042_v5 = vpop.xlane.xlu1 %712  ;;  %701 = vmin.xlane.f32.xlu0 %v700_v37 }
 0x143   :  { %vm714_vm5 = vcmp.eq.f32.partialorder %v3618_v60, %v3042_v5  ;;  %v483_v60 = vand.u32 65535, %v3622_v20 }
 0x144   :  { %v715_v39 = vsel %vm714_vm5, %v710_v6, inf  ;;  %v725_v6 = vcvt.s32.f32 %v723_v12 }
 0x145   :  { %v3047_v9 = vpop.xlane.xlu0 %457  ;;  %716 = vmin.xlane.f32.xlu1 %v715_v39  ;;  %v3623_v39 = vld [vmem:[#allocation37_spill] sm:$0xff] }
 0x146   :  { %vm459_vm6 = vcmp.eq.f32.partialorder %v3620_v42, %v3047_v9  ;;  %v3052_v46 = vpop.xlane.xlu1 %472  ;;  %v740_v42 = vcvt.s32.f32 %v738_v59  ;;  %v3625_v59 = vld [vmem:[#allocation44_spill] sm:$0xff] }
 0x147   :  { %v460_v21 = vsel %vm459_vm6, %v455_v26, inf  ;;  %vm474_vm7 = vcmp.eq.f32.partialorder %v3621_v43, %v3052_v46 }
 0x148   :  { %461 = vmin.xlane.f32.xlu0 %v460_v21  ;;  %v475_v24 = vsel %vm474_vm7, %v470_v31, inf  ;;  %v485_v21 = vcvt.s32.f32 %v483_v60  ;;  %v498_v31 = vand.u32 65535, %v2653_v25  ;;  %v3626_v60 = vld [vmem:[#allocation46_spill] sm:$0xff] }
 0x149   :  { %v3056_v37 = vpop.xlane.xlu0 %727  ;;  %476 = vmin.xlane.f32.xlu1 %v475_v24  ;;  %v753_v24 = vand.u32 65535, %v2666_v54  ;;  %v768_v25 = vand.u32 65535, %v3626_v60  ;;  %v3630_v60 = vld [vmem:[#allocation53_spill] sm:$0xff] }
 0x14a   :  { %vm729_vm0 = vcmp.eq.f32.partialorder %v3623_v39, %v3056_v37  ;;  %v500_v20 = vcvt.s32.f32 %v498_v31 }
 0x14b   :  { %v730_v47 = vsel %vm729_vm0, %v725_v6, inf  ;;  %v770_v31 = vcvt.s32.f32 %v768_v25 }
 0x14c   :  { %731 = vmin.xlane.f32.xlu0 %v730_v47  ;;  %v755_v47 = vcvt.s32.f32 %v753_v24 }
 0x14d   :  { %v3064_v26 = vpop.xlane.xlu0 %487 }
 0x14e   :  { %v3062_v62 = vpop.xlane.xlu1 %742  ;;  %vm489_vm8 = vcmp.eq.f32.partialorder %v3624_v27, %v3064_v26  ;;  %v513_v27 = vand.u32 65535, %v3627_v32  ;;  %v3629_v32 = vld [vmem:[#allocation50_spill] sm:$0xff] }
 0x14f   :  { %vm744_vm11 = vcmp.eq.f32.partialorder %v2646_v19, %v3062_v62  ;;  %v490_v43 = vsel %vm489_vm8, %v485_v21, inf }
 0x150   :  { %v745_v12 = vsel %vm744_vm11, %v740_v42, inf  ;;  %491 = vmin.xlane.f32.xlu0 %v490_v43  ;;  %v3628_v42 = vld [vmem:[#allocation45_spill] sm:$0xff]  ;;  %v515_v43 = vcvt.s32.f32 %v513_v27 }
 0x151   :  { %746 = vmin.xlane.f32.xlu1 %v745_v12 }
 0x152   :  { %v3072_v6 = vpop.xlane.xlu1 %502 }
 0x153   :  { %vm504_vm9 = vcmp.eq.f32.partialorder %v3625_v59, %v3072_v6 }
 0x154   :  { %v3077_v39 = vpop.xlane.xlu0 %757  ;;  %v505_v19 = vsel %vm504_vm9, %v500_v20, inf  ;;  %v528_v20 = vand.u32 65535, %v2777_v48 }
 0x155   :  { %506 = vmin.xlane.f32.xlu1 %v505_v19  ;;  %vm759_vm10 = vcmp.eq.f32.partialorder %v3628_v42, %v3077_v39  ;;  %v783_v19 = vand.u32 65535, %v3630_v60 }
 0x156   :  { %v760_v54 = vsel %vm759_vm10, %v755_v47, inf  ;;  %v3082_v21 = vpop.xlane.xlu1 %772  ;;  %v530_v25 = vcvt.s32.f32 %v528_v20 }
 0x157   :  { %761 = vmin.xlane.f32.xlu0 %v760_v54  ;;  %vm774_vm12 = vcmp.eq.f32.partialorder %v2737_v33, %v3082_v21  ;;  %v798_v33 = vand.u32 65535, %v2832_v52  ;;  %v785_v42 = vcvt.s32.f32 %v783_v19  ;;  %v543_v54 = vand.u32 65535, %v2841_v3 }
 0x158   :  { %v3084_v12 = vpop.xlane.xlu0 %517  ;;  %v775_v24 = vsel %vm774_vm12, %v770_v31, inf  ;;  %v558_v52 = vand.u32 65535, %v2876_v53  ;;  %v813_v3 = vand.u32 65535, %v2887_v40  ;;  %v828_v19 = vand.u32 65535, %v2902_v29 }
 0x159   :  { %vm519_vm13 = vcmp.eq.f32.partialorder %v3629_v32, %v3084_v12  ;;  %776 = vmin.xlane.f32.xlu1 %v775_v24  ;;  %v800_v20 = vcvt.s32.f32 %v798_v33  ;;  %v573_v53 = vand.u32 65535, %v2912_v16  ;;  %v588_v29 = vand.u32 65535, %v2929_v44 }
 0x15a   :  { %v520_v59 = vsel %vm519_vm13, %v515_v43, inf  ;;  %v560_v60 = vcvt.s32.f32 %v558_v52 }
 0x15b   :  { %521 = vmin.xlane.f32.xlu0 %v520_v59  ;;  %v3092_v47 = vpop.xlane.xlu1 %532 }
 0x15c   :  { %vm534_vm14 = vcmp.eq.f32.partialorder %v2801_v10, %v3092_v47  ;;  %v545_v10 = vcvt.s32.f32 %v543_v54 }
 0x15d   :  { %v3097_v27 = vpop.xlane.xlu0 %787  ;;  %v535_v48 = vsel %vm534_vm14, %v530_v25, inf }
 0x15e   :  { %536 = vmin.xlane.f32.xlu1 %v535_v48  ;;  %vm789_vm15 = vcmp.eq.f32.partialorder %v2828_v49, %v3097_v27  ;;  %v830_v48 = vcvt.s32.f32 %v828_v19  ;;  %v185_v19 = vld [vmem:[%s3459_s1 + $0x80] sm:$0xff] }
 0x15f   :  { %v790_v31 = vsel %vm789_vm15, %v785_v42, inf }
 0x160   :  { %791 = vmin.xlane.f32.xlu0 %v790_v31  ;;  %v590_v31 = vcvt.s32.f32 %v588_v29 }
 0x162   :  { %v3104_v24 = vpop.xlane.xlu0 %547 }
 0x163   :  { %v3102_v43 = vpop.xlane.xlu1 %802  ;;  %vm549_vm2 = vcmp.eq.f32.partialorder %v2865_v41, %v3104_v24 }
 0x164   :  { %vm804_vm1 = vcmp.eq.f32.partialorder %v2851_v17, %v3102_v43  ;;  %v550_v49 = vsel %vm549_vm2, %v545_v10, inf  ;;  %v815_v17 = vcvt.s32.f32 %v813_v3 }
 0x165   :  { %v805_v32 = vsel %vm804_vm1, %v800_v20, inf  ;;  %551 = vmin.xlane.f32.xlu0 %v550_v49  ;;  %v614_v20 = vcvt.f32.s32 %v2976_v45  ;;  %v644_v45 = vcvt.f32.s32 %v2994_v51 }
 0x166   :  { %806 = vmin.xlane.f32.xlu1 %v805_v32  ;;  %v3115_v25 = vpop.xlane.xlu0 %817  ;;  %v629_v32 = vcvt.f32.s32 %v2984_v36  ;;  %v186_v36 = vld [vmem:[%s3459_s1 + $0x88] sm:$0xff] }
 0x167   :  { %v3112_v59 = vpop.xlane.xlu1 %562  ;;  %vm819_vm4 = vcmp.eq.f32.partialorder %v2907_v57, %v3115_v25  ;;  %v615_v52 = vshll.u32 %v614_v20, 16  ;;  %v645_v51 = vshll.u32 %v644_v45, 16  ;;  %v674_v45 = vcvt.f32.s32 %v3015_v56 }
 0x168   :  { %vm564_vm3 = vcmp.eq.f32.partialorder %v2899_v22, %v3112_v59  ;;  %v820_v41 = vsel %vm819_vm4, %v815_v17, inf  ;;  %v575_v22 = vcvt.s32.f32 %v573_v53  ;;  %v630_v53 = vshll.u32 %v629_v32, 16 }
 0x169   :  { %v565_v33 = vsel %vm564_vm3, %v560_v60, inf  ;;  %821 = vmin.xlane.f32.xlu0 %v820_v41  ;;  %v389_v60 = vcvt.f32.s32 %v2992_v63  ;;  %v659_v63 = vcvt.f32.s32 %v3002_v23 }
 0x16a   :  { %566 = vmin.xlane.f32.xlu1 %v565_v33  ;;  %v3125_v42 = vpop.xlane.xlu0 %577 }
 0x16b   :  { %v3122_v40 = vpop.xlane.xlu1 %832  ;;  %vm579_vm6 = vcmp.eq.f32.partialorder %v2926_v28, %v3125_v42  ;;  %v374_v28 = vcvt.f32.s32 %v2982_v7  ;;  %v390_v29 = vshll.u32 %v389_v60, 16  ;;  %v187_v60 = vld [vmem:[%s3459_s1 + $0x90] sm:$0xff] }
 0x16c   :  { %vm834_vm5 = vcmp.eq.f32.partialorder %v2923_v15, %v3122_v40  ;;  %v580_v57 = vsel %vm579_vm6, %v575_v22, inf  ;;  %v404_v22 = vcvt.f32.s32 %v3004_v30 }
 0x16d   :  { %v835_v54 = vsel %vm834_vm5, %v830_v48, inf  ;;  %581 = vmin.xlane.f32.xlu0 %v580_v57  ;;  %v375_v33 = vshll.u32 %v374_v28, 16 }
 0x16e   :  { %836 = vmin.xlane.f32.xlu1 %v835_v54  ;;  %v169_v54 = vld [vmem:[%s3459_s1] sm:$0xff] }
 0x16f   :  { %v3131_v16 = vpop.xlane.xlu1 %592 }
 0x170   :  { %vm594_vm7 = vcmp.eq.f32.partialorder %v2935_v61, %v3131_v16 }
 0x171   :  { %v595_v44 = vsel %vm594_vm7, %v590_v31, inf }
 0x172   :  { %596 = vmin.xlane.f32.xlu1 %v595_v44 }
 0x1b5   :  { %v612_v10 = vpop.xlane.xlu0 %611 }
 0x1b6   :  { %v613_v15 = vcvt.f32.s32 %v612_v10  ;;  %v170_v10 = vld [vmem:[%s3459_s1 + $0x8] sm:$0xff] }
 0x1b8   :  { %v616_v3 = vadd.s32 %v615_v52, %v613_v15  ;;  %v3631_v15 = vmov 0.0  }
 0x1b9   :  { %v372_v49 = vpop.xlane.xlu0 %371 }
 0x1ba   :  { %v627_v61 = vpop.xlane.xlu1 %626  ;;  %v373_v17 = vcvt.f32.s32 %v372_v49  ;;  %vm858_vm0 = vcmp.eq.s32.totalorder %v616_v3, %v185_v19  ;;  %v660_v3 = vshll.u32 %v659_v63, 16  ;;  %v405_v49 = vshll.u32 %v404_v22, 16 }
 0x1bb   :  { %v628_v41 = vcvt.f32.s32 %v627_v61  ;;  %v1586_v52 = vsel %vm858_vm0, 1.0, %v3631_v15  ;;  %v689_v22 = vcvt.f32.s32 %v3022_v18  ;;  %v172_v18 = vld [vmem:[%s3459_s1 + $0x18] sm:$0xff] }
 0x1bc   :  { %v376_v48 = vadd.s32 %v375_v33, %v373_v17  ;;  %v419_v17 = vcvt.f32.s32 %v3012_v35 }
 0x1bd   :  { %v631_v7 = vadd.s32 %v630_v53, %v628_v41  ;;  %v642_v31 = vpop.xlane.xlu0 %641  ;;  %v188_v41 = vld [vmem:[%s3459_s1 + $0x98] sm:$0xff] }
 0x1be   :  { %v387_v57 = vpop.xlane.xlu1 %386  ;;  %v643_v20 = vcvt.f32.s32 %v642_v31  ;;  %vm842_vm8 = vcmp.eq.s32.totalorder %v376_v48, %v169_v54  ;;  %v420_v31 = vshll.u32 %v419_v17, 16  ;;  %v675_v54 = vshll.u32 %v674_v45, 16  ;;  %v190_v45 = vld [vmem:[%s3459_s1 + $0xa8] sm:$0xff] }
 0x1bf   :  { %vm859_vm11 = vcmp.eq.s32.totalorder %v631_v7, %v186_v36  ;;  %v388_v44 = vcvt.f32.s32 %v387_v57  ;;  %v1570_v36 = vsel %vm842_vm8, 1.0, %v3631_v15  ;;  %v171_v57 = vld [vmem:[%s3459_s1 + $0x10] sm:$0xff]  ;;  %v704_v17 = vcvt.f32.s32 %v3037_v2 }
 0x1c0   :  { %v1587_v23 = vsel %vm859_vm11, 1.0, %v3631_v15  ;;  %v646_v32 = vadd.s32 %v645_v51, %v643_v20  ;;  %v434_v51 = vcvt.f32.s32 %v3025_v4  ;;  %v189_v4 = vld [vmem:[%s3459_s1 + $0xa0] sm:$0xff] }
 0x1c1   :  { %v391_v30 = vadd.s32 %v390_v29, %v388_v44  ;;  %v1693_v28 = vpack.i.bf16 %v1587_v23, %v1586_v52  ;;  %v402_v61 = vpop.xlane.xlu0 %401 }
 0x1c2   :  { %v657_v19 = vpop.xlane.xlu1 %656  ;;  %v403_v33 = vcvt.f32.s32 %v402_v61  ;;  %vm860_vm10 = vcmp.eq.s32.totalorder %v646_v32, %v187_v60  ;;  %v690_v32 = vshll.u32 %v689_v22, 16  ;;  %v449_v60 = vcvt.f32.s32 %v3032_v34 }
 0x1c3   :  { %vm843_vm9 = vcmp.eq.s32.totalorder %v391_v30, %v170_v10  ;;  %v658_v53 = vcvt.f32.s32 %v657_v19  ;;  %1694 = vrot.lane.b32.xlu0 %v1693_v28, %s1800_s26  ;;  %v1588_v20 = vsel %vm860_vm10, 1.0, %v3631_v15  ;;  %v719_v34 = vcvt.f32.s32 %v3042_v5  ;;  %v174_v5 = vld [vmem:[%s3459_s1 + $0x28] sm:$0xff] }
 0x1c4   :  { %v1571_v7 = vsel %vm843_vm9, 1.0, %v3631_v15  ;;  %v406_v35 = vadd.s32 %v405_v49, %v403_v33  ;;  %v435_v49 = vshll.u32 %v434_v51, 16 }
 0x1c5   :  { %v661_v29 = vadd.s32 %v660_v3, %v658_v53  ;;  %v1698_v63 = vpack.i.bf16 %v1571_v7, %v1570_v36  ;;  %v672_v48 = vpop.xlane.xlu0 %671 }
 0x1c6   :  { %v417_v56 = vpop.xlane.xlu1 %416  ;;  %v673_v52 = vcvt.f32.s32 %v672_v48  ;;  %vm844_vm13 = vcmp.eq.s32.totalorder %v406_v35, %v171_v57  ;;  %v705_v57 = vshll.u32 %v704_v17, 16 }
 0x1c7   :  { %vm861_vm12 = vcmp.eq.s32.totalorder %v661_v29, %v188_v41  ;;  %v418_v44 = vcvt.f32.s32 %v417_v56  ;;  %1699 = vrot.lane.b32.xlu1 %v1698_v63, %s1800_s26  ;;  %v1572_v53 = vsel %vm844_vm13, 1.0, %v3631_v15  ;;  %v173_v29 = vld [vmem:[%s3459_s1 + $0x20] sm:$0xff]  ;;  %v450_v63 = vshll.u32 %v449_v60, 16 }
 0x1c8   :  { %v1589_v10 = vsel %vm861_vm12, 1.0, %v3631_v15  ;;  %v676_v28 = vadd.s32 %v675_v54, %v673_v52 }
 0x1c9   :  { %v1703_v23 = vpack.i.bf16 %v1589_v10, %v1588_v20  ;;  %v421_v30 = vadd.s32 %v420_v31, %v418_v44  ;;  %v432_v61 = vpop.xlane.xlu0 %431  ;;  %v720_v20 = vshll.u32 %v719_v34, 16  ;;  %v464_v10 = vcvt.f32.s32 %v3047_v9  ;;  %v192_v9 = vld [vmem:[%s3459_s1 + $0xb8] sm:$0xff] }
 0x1ca   :  { %v687_v3 = vpop.xlane.xlu1 %686  ;;  %v433_v41 = vcvt.f32.s32 %v432_v61  ;;  %vm862_vm15 = vcmp.eq.s32.totalorder %v676_v28, %v189_v4  ;;  %v749_v34 = vcvt.f32.s32 %v3062_v62  ;;  %v193_v62 = vld [vmem:[%s3459_s1 + $0xc0] sm:$0xff] }
 0x1cb   :  { %vm845_vm14 = vcmp.eq.s32.totalorder %v421_v30, %v172_v18  ;;  %v688_v19 = vcvt.f32.s32 %v687_v3  ;;  %1704 = vrot.lane.b32.xlu1 %v1703_v23, %s1800_s26  ;;  %v1590_v56 = vsel %vm862_vm15, 1.0, %v3631_v15  ;;  %v191_v18 = vld [vmem:[%s3459_s1 + $0xb0] sm:$0xff]  ;;  %v479_v23 = vcvt.f32.s32 %v3052_v46 }
 0x1cc   :  { %v1573_v33 = vsel %vm845_vm14, 1.0, %v3631_v15  ;;  %v436_v35 = vadd.s32 %v435_v49, %v433_v41  ;;  %v734_v46 = vcvt.f32.s32 %v3056_v37  ;;  %v176_v37 = vld [vmem:[%s3459_s1 + $0x38] sm:$0xff] }
 0x1cd   :  { %v1708_v36 = vpack.i.bf16 %v1573_v33, %v1572_v53  ;;  %v691_v7 = vadd.s32 %v690_v32, %v688_v19  ;;  %v465_v19 = vshll.u32 %v464_v10, 16  ;;  %v480_v53 = vshll.u32 %v479_v23, 16  ;;  %v175_v33 = vld [vmem:[%s3459_s1 + $0x30] sm:$0xff]  ;;  %v194_v23 = vld [vmem:[%s3459_s1 + $0xc8] sm:$0xff] }
 0x1ce   :  { %v447_v2 = vpop.xlane.xlu1 %446  ;;  %vm846_vm2 = vcmp.eq.s32.totalorder %v436_v35, %v173_v29 }
 0x1cf   :  { %vm863_vm1 = vcmp.eq.s32.totalorder %v691_v7, %v190_v45  ;;  %v448_v22 = vcvt.f32.s32 %v447_v2  ;;  %1709 = vrot.lane.b32.xlu1 %v1708_v36, %s1800_s26  ;;  %v702_v51 = vpop.xlane.xlu0 %701  ;;  %v1574_v4 = vsel %vm846_vm2, 1.0, %v3631_v15 }
 0x1d0   :  { %v1591_v31 = vsel %vm863_vm1, 1.0, %v3631_v15  ;;  %v703_v54 = vcvt.f32.s32 %v702_v51  ;;  %v750_v51 = vshll.u32 %v749_v34, 16 }
 0x1d1   :  { %v1713_v44 = vpack.i.bf16 %v1591_v31, %v1590_v56  ;;  %v451_v48 = vadd.s32 %v450_v63, %v448_v22  ;;  %v735_v63 = vshll.u32 %v734_v46, 16  ;;  %v494_v22 = vcvt.f32.s32 %v3064_v26  ;;  %v178_v46 = vld [vmem:[%s3459_s1 + $0x48] sm:$0xff] }
 0x1d2   :  { %v717_v52 = vpop.xlane.xlu1 %716  ;;  %v706_v30 = vadd.s32 %v705_v57, %v703_v54  ;;  %v509_v26 = vcvt.f32.s32 %v3072_v6  ;;  %v779_v6 = vcvt.f32.s32 %v3082_v21  ;;  %v195_v21 = vld [vmem:[%s3459_s1 + $0xd0] sm:$0xff] }
 0x1d3   :  { %vm847_vm3 = vcmp.eq.s32.totalorder %v451_v48, %v174_v5  ;;  %v718_v32 = vcvt.f32.s32 %v717_v52  ;;  %1714 = vrot.lane.b32.xlu0 %v1713_v44, %s1800_s26  ;;  %v764_v52 = vcvt.f32.s32 %v3077_v39 }
 0x1d4   :  { %v1575_v28 = vsel %vm847_vm3, 1.0, %v3631_v15  ;;  %vm864_vm4 = vcmp.eq.s32.totalorder %v706_v30, %v191_v18 }
 0x1d5   :  { %v1718_v3 = vpack.i.bf16 %v1575_v28, %v1574_v4  ;;  %v721_v49 = vadd.s32 %v720_v20, %v718_v32  ;;  %v462_v60 = vpop.xlane.xlu0 %461  ;;  %v1592_v41 = vsel %vm864_vm4, 1.0, %v3631_v15  ;;  %v495_v20 = vshll.u32 %v494_v22, 16  ;;  %v177_v4 = vld [vmem:[%s3459_s1 + $0x40] sm:$0xff] }
 0x1d6   :  { %v463_v61 = vcvt.f32.s32 %v462_v60  ;;  %v477_v17 = vpop.xlane.xlu1 %476  ;;  %v765_v39 = vshll.u32 %v764_v52, 16 }
 0x1d7   :  { %vm865_vm5 = vcmp.eq.s32.totalorder %v721_v49, %v192_v9  ;;  %v478_v45 = vcvt.f32.s32 %v477_v17  ;;  %1719 = vrot.lane.b32.xlu1 %v1718_v3, %s1800_s26  ;;  %v510_v9 = vshll.u32 %v509_v26, 16  ;;  %v524_v49 = vcvt.f32.s32 %v3084_v12  ;;  %v180_v26 = vld [vmem:[%s3459_s1 + $0x58] sm:$0xff] }
 0x1d8   :  { %v1593_v36 = vsel %vm865_vm5, 1.0, %v3631_v15  ;;  %v466_v7 = vadd.s32 %v465_v19, %v463_v61 }
 0x1d9   :  { %v1723_v29 = vpack.i.bf16 %v1593_v36, %v1592_v41  ;;  %v481_v35 = vadd.s32 %v480_v53, %v478_v45  ;;  %v732_v2 = vpop.xlane.xlu0 %731  ;;  %v780_v45 = vshll.u32 %v779_v6, 16  ;;  %v539_v36 = vcvt.f32.s32 %v3092_v47 }
 0x1da   :  { %vm848_vm6 = vcmp.eq.s32.totalorder %v466_v7, %v175_v33  ;;  %v733_v57 = vcvt.f32.s32 %v732_v2 }
 0x1db   :  { %vm849_vm7 = vcmp.eq.s32.totalorder %v481_v35, %v176_v37  ;;  %1724 = vrot.lane.b32.xlu0 %v1723_v29, %s1800_s26  ;;  %v1576_v56 = vsel %vm848_vm6, 1.0, %v3631_v15  ;;  %v525_v35 = vshll.u32 %v524_v49, 16  ;;  %v540_v47 = vshll.u32 %v539_v36, 16 }
 0x1dc   :  { %v1577_v31 = vsel %vm849_vm7, 1.0, %v3631_v15  ;;  %v736_v5 = vadd.s32 %v735_v63, %v733_v57  ;;  %v196_v63 = vld [vmem:[%s3459_s1 + $0xd8] sm:$0xff]  ;;  %v794_v57 = vcvt.f32.s32 %v3097_v27 }
 0x1dd   :  { %v1728_v44 = vpack.i.bf16 %v1577_v31, %v1576_v56  ;;  %v492_v54 = vpop.xlane.xlu0 %491 }
 0x1de   :  { %v747_v48 = vpop.xlane.xlu1 %746  ;;  %v493_v18 = vcvt.f32.s32 %v492_v54  ;;  %vm866_vm0 = vcmp.eq.s32.totalorder %v736_v5, %v193_v62  ;;  %v179_v5 = vld [vmem:[%s3459_s1 + $0x50] sm:$0xff]  ;;  %v795_v27 = vshll.u32 %v794_v57, 16  ;;  %v599_v57 = vcvt.f32.s32 %v3131_v16 }
 0x1df   :  { %v748_v10 = vcvt.f32.s32 %v747_v48  ;;  %1729 = vrot.lane.b32.xlu1 %v1728_v44, %s1800_s26  ;;  %v1594_v60 = vsel %vm866_vm0, 1.0, %v3631_v15  ;;  %v809_v44 = vcvt.f32.s32 %v3102_v43  ;;  %v183_v16 = vld [vmem:[%s3459_s1 + $0x70] sm:$0xff]  ;;  %vm1323_vm0 = vcmask 23568  }
 0x1e0   :  { %v496_v32 = vadd.s32 %v495_v20, %v493_v18  ;;  %v554_v18 = vcvt.f32.s32 %v3104_v24 }
 0x1e1   :  { %v751_v30 = vadd.s32 %v750_v51, %v748_v10  ;;  %v810_v43 = vshll.u32 %v809_v44, 16 }
 0x1e2   :  { %v507_v28 = vpop.xlane.xlu1 %506  ;;  %vm850_vm8 = vcmp.eq.s32.totalorder %v496_v32, %v177_v4 }
 0x1e3   :  { %vm867_vm11 = vcmp.eq.s32.totalorder %v751_v30, %v194_v23  ;;  %v508_v3 = vcvt.f32.s32 %v507_v28  ;;  %v1578_v7 = vsel %vm850_vm8, 1.0, %v3631_v15  ;;  %v197_v30 = vld [vmem:[%s3459_s1 + $0xe0] sm:$0xff]  ;;  %v569_v28 = vcvt.f32.s32 %v3112_v59 }
 0x1e4   :  { %v1595_v19 = vsel %vm867_vm11, 1.0, %v3631_v15  ;;  %v762_v61 = vpop.xlane.xlu0 %761  ;;  %vm1388_vm11 = vcmask 31768  }
 0x1e5   :  { %v1733_v17 = vpack.i.bf16 %v1595_v19, %v1594_v60  ;;  %v511_v53 = vadd.s32 %v510_v9, %v508_v3  ;;  %v763_v33 = vcvt.f32.s32 %v762_v61  ;;  %v198_v60 = vld [vmem:[%s3459_s1 + $0xe8] sm:$0xff]  ;;  %v570_v59 = vshll.u32 %v569_v28, 16 }
 0x1e6   :  { %v777_v41 = vpop.xlane.xlu1 %776 }
 0x1e7   :  { %vm851_vm9 = vcmp.eq.s32.totalorder %v511_v53, %v178_v46  ;;  %v766_v12 = vadd.s32 %v765_v39, %v763_v33  ;;  %1734 = vrot.lane.b32.xlu0 %v1733_v17, %s1800_s26  ;;  %v778_v34 = vcvt.f32.s32 %v777_v41  ;;  %v555_v39 = vshll.u32 %v554_v18, 16  ;;  %v181_v53 = vld [vmem:[%s3459_s1 + $0x60] sm:$0xff] }
 0x1e8   :  { %v1579_v37 = vsel %vm851_vm9, 1.0, %v3631_v15  ;;  %v522_v29 = vpop.xlane.xlu0 %521  ;;  %v824_v46 = vcvt.f32.s32 %v3115_v25 }
 0x1e9   :  { %v1738_v2 = vpack.i.bf16 %v1579_v37, %v1578_v7  ;;  %v523_v22 = vcvt.f32.s32 %v522_v29  ;;  %vm868_vm10 = vcmp.eq.s32.totalorder %v766_v12, %v195_v21  ;;  %v781_v56 = vadd.s32 %v780_v45, %v778_v34  ;;  %v182_v34 = vld [vmem:[%s3459_s1 + $0x68] sm:$0xff] }
 0x1ea   :  { %v1596_v62 = vsel %vm868_vm10, 1.0, %v3631_v15  ;;  %v839_v45 = vcvt.f32.s32 %v3122_v40  ;;  %v825_v36 = vshll.u32 %v824_v46, 16  ;;  %v584_v7 = vcvt.f32.s32 %v3125_v42  ;;  %v199_v40 = vld [vmem:[%s3459_s1 + $0xf0] sm:$0xff] }
 0x1eb   :  { %v526_v31 = vadd.s32 %v525_v35, %v523_v22  ;;  %1739 = vrot.lane.b32.xlu1 %v1738_v2, %s1800_s26  ;;  %vm869_vm12 = vcmp.eq.s32.totalorder %v781_v56, %v196_v63  ;;  %v537_v51 = vpop.xlane.xlu1 %536 }
 0x1ec   :  { %v1597_v48 = vsel %vm869_vm12, 1.0, %v3631_v15  ;;  %v538_v54 = vcvt.f32.s32 %v537_v51  ;;  %v840_v22 = vshll.u32 %v839_v45, 16  ;;  %v200_v51 = vld [vmem:[%s3459_s1 + $0xf8] sm:$0xff] }
 0x1ed   :  { %v1743_v20 = vpack.i.bf16 %v1597_v48, %v1596_v62  ;;  %v792_v10 = vpop.xlane.xlu0 %791  ;;  %vm852_vm13 = vcmp.eq.s32.totalorder %v526_v31, %v179_v5  ;;  %v585_v31 = vshll.u32 %v584_v7, 16 }
 0x1ee   :  { %v541_v52 = vadd.s32 %v540_v47, %v538_v54  ;;  %v793_v23 = vcvt.f32.s32 %v792_v10  ;;  %v1580_v9 = vsel %vm852_vm13, 1.0, %v3631_v15 }
 0x1ef   :  { %1744 = vrot.lane.b32.xlu0 %v1743_v20, %s1800_s26  ;;  %v600_v20 = vshll.u32 %v599_v57, 16  ;;  %v3644_v57 = vunpack.c.h.bf16 %v2265_v0 }
 0x1f0   :  { %vm853_vm14 = vcmp.eq.s32.totalorder %v541_v52, %v180_v26  ;;  %v796_v32 = vadd.s32 %v795_v27, %v793_v23  ;;  %v184_v52 = vld [vmem:[%s3459_s1 + $0x78] sm:$0xff]  ;;  %s1801_s1 = smov [#allocation3]  }
 0x1f1   :  { %v1581_v6 = vsel %vm853_vm14, 1.0, %v3631_v15 }
 0x1f2   :  { %v552_v3 = vpop.xlane.xlu0 %551  ;;  %v1748_v49 = vpack.i.bf16 %v1581_v6, %v1580_v9  ;;  %vm870_vm15 = vcmp.eq.s32.totalorder %v796_v32, %v197_v30 }
 0x1f3   :  { %v807_v4 = vpop.xlane.xlu1 %806  ;;  %v553_v19 = vcvt.f32.s32 %v552_v3  ;;  %v1598_v21 = vsel %vm870_vm15, 1.0, %v3631_v15  ;;  %v3633_v3 = vld [vmem:[#allocation8_spill] sm:$0xff] }
 0x1f4   :  { %v808_v24 = vcvt.f32.s32 %v807_v4  ;;  %1749 = vrot.lane.b32.xlu1 %v1748_v49, %s1800_s26  ;;  %v3634_v49 = vunpack.c.l.bf16 %v2180_v1 }
 0x1f5   :  { %v556_v17 = vadd.s32 %v555_v39, %v553_v19 }
 0x1f6   :  { %v811_v61 = vadd.s32 %v810_v43, %v808_v24  ;;  %v822_v25 = vpop.xlane.xlu0 %821  ;;  %v3632_v24 = vunpack.c.h.bf16 %v2180_v1  ;;  %v3639_v1 = vld [vmem:[#allocation7_spill] sm:$0xff] }
 0x1f7   :  { %v567_v33 = vpop.xlane.xlu1 %566  ;;  %v823_v29 = vcvt.f32.s32 %v822_v25  ;;  %vm854_vm2 = vcmp.eq.s32.totalorder %v556_v17, %v181_v53  ;;  %v3636_v17 = vunpack.c.h.bf16 %v2184_v38  ;;  %v3640_v25 = vunpack.c.h.bf16 %v2224_v58 }
 0x1f8   :  { %vm871_vm1 = vcmp.eq.s32.totalorder %v811_v61, %v198_v60  ;;  %v568_v41 = vcvt.f32.s32 %v567_v33  ;;  %v1582_v47 = vsel %vm854_vm2, 1.0, %v3631_v15  ;;  %v1373_v39 = vsub.f32 %v3633_v3, %v3632_v24  ;;  %v3635_v60 = vld [vmem:[#allocation6_spill] sm:$0xff] }
 0x1f9   :  { %v1599_v12 = vsel %vm871_vm1, 1.0, %v3631_v15  ;;  %v826_v2 = vadd.s32 %v825_v36, %v823_v29  ;;  %v1372_v19 = vsub.f32 %v3635_v60, %v3634_v49  ;;  %v3638_v33 = vunpack.c.l.bf16 %v2184_v38  ;;  %v3641_v36 = vld [vmem:[#allocation11_spill] sm:$0xff]  ;;  %v3643_v38 = vld [vmem:[#allocation10_spill] sm:$0xff] }
 0x1fa   :  { %v1753_v37 = vpack.i.bf16 %v1599_v12, %v1598_v21  ;;  %v571_v35 = vadd.s32 %v570_v59, %v568_v41  ;;  %v582_v56 = vpop.xlane.xlu0 %581  ;;  %v3637_v59 = vld [vmem:[#allocation9_spill] sm:$0xff]  ;;  %v1375_v7 = vsub.f32 %v3641_v36, %v3640_v25  ;;  %v3660_v25 = vunpack.c.h.bf16 %v2458_v14 }
 0x1fb   :  { %v837_v63 = vpop.xlane.xlu1 %836  ;;  %v583_v44 = vcvt.f32.s32 %v582_v56  ;;  %vm872_vm4 = vcmp.eq.s32.totalorder %v826_v2, %v199_v40  ;;  %v1357_v53 = vsub.f32 %v3637_v59, %v3636_v17  ;;  %v1356_v45 = vsub.f32 %v3639_v1, %v3638_v33  ;;  %v3659_v59 = vld [vmem:[#allocation18_spill] sm:$0xff] }
 0x1fc   :  { %1754 = vrot.lane.b32.xlu0 %v1753_v37, %s1800_s26  ;;  %vm855_vm3 = vcmp.eq.s32.totalorder %v571_v35, %v182_v34  ;;  %v838_v42 = vcvt.f32.s32 %v837_v63  ;;  %v1600_v10 = vsel %vm872_vm4, 1.0, %v3631_v15  ;;  %v3642_v37 = vunpack.c.l.bf16 %v2224_v58 }
 0x1fd   :  { %v1583_v5 = vsel %vm855_vm3, 1.0, %v3631_v15  ;;  %v586_v54 = vadd.s32 %v585_v31, %v583_v44  ;;  %v3646_v56 = vunpack.c.l.bf16 %v2265_v0  ;;  %v3647_v31 = vld [vmem:[#allocation12_spill] sm:$0xff]  ;;  %v3649_v0 = vld [vmem:[#allocation15_spill] sm:$0xff]  ;;  %v3658_v17 = vunpack.c.l.bf16 %v2414_v50 }
 0x1fe   :  { %v1758_v62 = vpack.i.bf16 %v1583_v5, %v1582_v47  ;;  %v841_v48 = vadd.s32 %v840_v22, %v838_v42  ;;  %v1374_v34 = vsub.f32 %v3643_v38, %v3642_v37  ;;  %v3645_v42 = vld [vmem:[#allocation13_spill] sm:$0xff]  ;;  %v3663_v37 = vld [vmem:[#allocation23_spill] sm:$0xff] }
 0x1ff   :  { %v597_v27 = vpop.xlane.xlu1 %596  ;;  %vm856_vm6 = vcmp.eq.s32.totalorder %v586_v54, %v183_v16  ;;  %v1359_v58 = vsub.f32 %v3645_v42, %v3644_v57  ;;  %v1358_v47 = vsub.f32 %v3647_v31, %v3646_v56  ;;  %v3648_v54 = vunpack.c.h.bf16 %v2307_v8 }
 0x200   :  { %vm873_vm5 = vcmp.eq.s32.totalorder %v841_v48, %v200_v51  ;;  %v598_v26 = vcvt.f32.s32 %v597_v27  ;;  %1759 = vrot.lane.b32.xlu1 %v1758_v62, %s1800_s26  ;;  %v1584_v30 = vsel %vm856_vm6, 1.0, %v3631_v15  ;;  %v3664_v42 = vunpack.c.h.bf16 %v2509_v13  ;;  %v3666_v13 = vld [vmem:[#allocation35_spill] sm:$0xff] }
 0x201   :  { %v1601_v18 = vsel %vm873_vm5, 1.0, %v3631_v15  ;;  %v1377_v27 = vsub.f32 %v3649_v0, %v3648_v54 }
 0x202   :  { %v1763_v23 = vpack.i.bf16 %v1601_v18, %v1600_v10  ;;  %v601_v43 = vadd.s32 %v600_v20, %v598_v26  ;;  %v3650_v20 = vunpack.c.l.bf16 %v2307_v8  ;;  %v3651_v26 = vld [vmem:[#allocation14_spill] sm:$0xff]  ;;  %v3653_v8 = vld [vmem:[#allocation17_spill] sm:$0xff] }
 0x204   :  { %vm857_vm7 = vcmp.eq.s32.totalorder %v601_v43, %v184_v52  ;;  %1764 = vrot.lane.b32.xlu0 %v1763_v23, %s1800_s26  ;;  %v1376_v10 = vsub.f32 %v3651_v26, %v3650_v20  ;;  %v3668_v26 = vld [vmem:[#allocation39_spill] sm:$0xff] }
 0x205   :  { %v1585_v32 = vsel %vm857_vm7, 1.0, %v3631_v15 }
 0x206   :  { %v1768_v4 = vpack.i.bf16 %v1585_v32, %v1584_v30 }
 0x208   :  { %1769 = vrot.lane.b32.xlu1 %v1768_v4, %s1800_s26  ;;  %v3652_v4 = vunpack.c.h.bf16 %v2362_v55  ;;  %s1550_s26 = sshll.u32 %s1801_s1, 4  ;;  %s1551_s26 = int_to_ptr.vmem [resolvable:$true] %s1550_s26 }
 0x209   :  { %s1773_s24 = scalar_lea.vmem %s1551_s26, 128  ;;  %p1778_p1 = scmp.lt.s32.totalorder %s1551_s26, %s1551_s26 }
 0x20a   :  { %p1774_p0 = scmp.ne.s32.totalorder %s1551_s26, %s1773_s24  ;;  %p1779_p2 = scmp.lt.s32.totalorder %s1773_s24, %s1773_s24 }
 0x20c   :  { %p1780_p3 = por %p1779_p2, %p1778_p1 }
 0x20e   :  { %p1781_p4 = pnand %p1780_p3, %p1774_p0 }
 0x235   :  { %v1695_v28 = vpop.permute.xlu0 %1694 }
 0x236   :  { %v1697_v9 = vunpack.i.h.bf16 %v1695_v28  ;;  %v1696_v6 = vunpack.i.l.bf16 %v1695_v28  ;;  %v1361_v28 = vsub.f32 %v3653_v8, %v3652_v4  ;;  %v3670_v4 = vld [vmem:[#allocation42_spill] sm:$0xff]  ;;  %v3671_v8 = vld [vmem:[#allocation43_spill] sm:$0xff] }
 0x238   :  { %1340 = vst.msk [vmem:[#allocation2 + $0x80] sm:$0xff] %vm1323_vm0, %v1696_v6  ;;  %1341 = vst.msk [vmem:[#allocation2 + $0x88] sm:$0xff] %vm1323_vm0, %v1697_v9  ;;  %v3654_v9 = vunpack.c.l.bf16 %v2362_v55  ;;  %v3655_v6 = vld [vmem:[#allocation16_spill] sm:$0xff]  ;;  %v3657_v55 = vld [vmem:[#allocation19_spill] sm:$0xff] }
 0x239   :  { %1405 = vst.msk [vmem:[#allocation2 + $0x80] sm:$0xff] %vm1388_vm11, %v1372_v19  ;;  %1406 = vst.msk [vmem:[#allocation2 + $0x88] sm:$0xff] %vm1388_vm11, %v1373_v39  ;;  %v1700_v15 = vpop.permute.xlu1 %1699 }
 0x23a   :  { %v1702_v46 = vunpack.i.h.bf16 %v1700_v15  ;;  %v1701_v61 = vunpack.i.l.bf16 %v1700_v15  ;;  %v1360_v24 = vsub.f32 %v3655_v6, %v3654_v9 }
 0x23c   :  { %1324 = vst.msk [vmem:[#allocation2] sm:$0xff] %vm1323_vm0, %v1701_v61  ;;  %1325 = vst.msk [vmem:[#allocation2 + $0x8] sm:$0xff] %vm1323_vm0, %v1702_v46  ;;  %v3656_v46 = vunpack.c.h.bf16 %v2414_v50  ;;  %v3661_v50 = vld [vmem:[#allocation24_spill] sm:$0xff] }
 0x23d   :  { %1389 = vst.msk [vmem:[#allocation2] sm:$0xff] %vm1388_vm11, %v1356_v45  ;;  %1390 = vst.msk [vmem:[#allocation2 + $0x8] sm:$0xff] %vm1388_vm11, %v1357_v53  ;;  %v1705_v21 = vpop.permute.xlu1 %1704  ;;  %v1378_v53 = vsub.f32 %v3659_v59, %v3658_v17  ;;  %v1363_v36 = vsub.f32 %v3661_v50, %v3660_v25  ;;  %v3674_v59 = vld [vmem:[#allocation51_spill] sm:$0xff]  ;;  %v3676_v25 = vld [vmem:[#allocation56_spill] sm:$0xff] }
 0x23e   :  { %v1707_v12 = vunpack.i.h.bf16 %v1705_v21  ;;  %v1706_v41 = vunpack.i.l.bf16 %v1705_v21  ;;  %v1379_v61 = vsub.f32 %v3657_v55, %v3656_v46  ;;  %v3677_v50 = vld [vmem:[#allocation57_spill] sm:$0xff] }
 0x240   :  { %1342 = vst.msk [vmem:[#allocation2 + $0x90] sm:$0xff] %vm1323_vm0, %v1706_v41  ;;  %1343 = vst.msk [vmem:[#allocation2 + $0x98] sm:$0xff] %vm1323_vm0, %v1707_v12  ;;  %v1437_v29 = vld [vmem:[#allocation2 + $0x80] sm:$0xff]  ;;  %v1438_v35 = vld [vmem:[#allocation2 + $0x88] sm:$0xff] }
 0x241   :  { %1407 = vst.msk [vmem:[#allocation2 + $0x90] sm:$0xff] %vm1388_vm11, %v1374_v34  ;;  %1408 = vst.msk [vmem:[#allocation2 + $0x98] sm:$0xff] %vm1388_vm11, %v1375_v7  ;;  %v1710_v40 = vpop.permute.xlu1 %1709  ;;  %v1461_v2 = vpack.c.bf16 %v1438_v35, %v1437_v29  ;;  %v3662_v7 = vunpack.c.l.bf16 %v2458_v14 }
 0x242   :  { %v1712_v63 = vunpack.i.h.bf16 %v1710_v40  ;;  %v1711_v22 = vunpack.i.l.bf16 %v1710_v40 }
 0x243   :  { %1485 = vxpose.xlu0.c.b16.start [1/8] (narrow) %v1461_v2, 16  ;;  %v1362_v38 = vsub.f32 %v3663_v37, %v3662_v7 }
 0x244   :  { %1326 = vst.msk [vmem:[#allocation2 + $0x10] sm:$0xff] %vm1323_vm0, %v1711_v22  ;;  %1327 = vst.msk [vmem:[#allocation2 + $0x18] sm:$0xff] %vm1323_vm0, %v1712_v63  ;;  %v1421_v5 = vld [vmem:[#allocation2] sm:$0xff]  ;;  %v1422_v51 = vld [vmem:[#allocation2 + $0x8] sm:$0xff] }
 0x245   :  { %1391 = vst.msk [vmem:[#allocation2 + $0x10] sm:$0xff] %vm1388_vm11, %v1358_v47  ;;  %1392 = vst.msk [vmem:[#allocation2 + $0x18] sm:$0xff] %vm1388_vm11, %v1359_v58  ;;  %v1715_v44 = vpop.permute.xlu0 %1714  ;;  %v1453_v62 = vpack.c.bf16 %v1422_v51, %v1421_v5  ;;  %v3665_v58 = vld [vmem:[#allocation26_spill] sm:$0xff] }
 0x246   :  { %v1717_v48 = vunpack.i.h.bf16 %v1715_v44  ;;  %v1716_v16 = vunpack.i.l.bf16 %v1715_v44  ;;  %v1381_v56 = vsub.f32 %v3665_v58, %v3664_v42 }
 0x247   :  { %1469 = vxpose.xlu1.c.b16.start [1/8] (narrow) %v1453_v62, 16 }
 0x248   :  { %1344 = vst.msk [vmem:[#allocation2 + $0xa0] sm:$0xff] %vm1323_vm0, %v1716_v16  ;;  %1345 = vst.msk [vmem:[#allocation2 + $0xa8] sm:$0xff] %vm1323_vm0, %v1717_v48  ;;  %v1439_v18 = vld [vmem:[#allocation2 + $0x90] sm:$0xff]  ;;  %v1440_v52 = vld [vmem:[#allocation2 + $0x98] sm:$0xff] }
 0x249   :  { %1409 = vst.msk [vmem:[#allocation2 + $0xa0] sm:$0xff] %vm1388_vm11, %v1376_v10  ;;  %1410 = vst.msk [vmem:[#allocation2 + $0xa8] sm:$0xff] %vm1388_vm11, %v1377_v27  ;;  %v1720_v23 = vpop.permute.xlu1 %1719  ;;  %v1462_v43 = vpack.c.bf16 %v1440_v52, %v1439_v18  ;;  %v3667_v48 = vld [vmem:[#allocation36_spill] sm:$0xff] }
 0x24a   :  { %v1722_v30 = vunpack.i.h.bf16 %v1720_v23  ;;  %v1721_v32 = vunpack.i.l.bf16 %v1720_v23  ;;  %v3669_v10 = vld [vmem:[#allocation40_spill] sm:$0xff] }
 0x24b   :  { %1486 = vxpose.xlu0.c.b16.cont [2/8] (narrow) %v1462_v43, 16 }
 0x24c   :  { %1328 = vst.msk [vmem:[#allocation2 + $0x20] sm:$0xff] %vm1323_vm0, %v1721_v32  ;;  %1329 = vst.msk [vmem:[#allocation2 + $0x28] sm:$0xff] %vm1323_vm0, %v1722_v30  ;;  %v1423_v3 = vld [vmem:[#allocation2 + $0x10] sm:$0xff]  ;;  %v1424_v39 = vld [vmem:[#allocation2 + $0x18] sm:$0xff] }
 0x24d   :  { %1393 = vst.msk [vmem:[#allocation2 + $0x20] sm:$0xff] %vm1388_vm11, %v1360_v24  ;;  %1394 = vst.msk [vmem:[#allocation2 + $0x28] sm:$0xff] %vm1388_vm11, %v1361_v28  ;;  %v1725_v49 = vpop.permute.xlu0 %1724  ;;  %v1454_v60 = vpack.c.bf16 %v1424_v39, %v1423_v3 }
 0x24e   :  { %v1727_v19 = vunpack.i.h.bf16 %v1725_v49  ;;  %v1726_v15 = vunpack.i.l.bf16 %v1725_v49  ;;  %v3672_v49 = vld [vmem:[#allocation48_spill] sm:$0xff] }
 0x24f   :  { %1470 = vxpose.xlu1.c.b16.cont [2/8] (narrow) %v1454_v60, 16  ;;  %v3673_v60 = vld [vmem:[#allocation49_spill] sm:$0xff] }
 0x250   :  { %1346 = vst.msk [vmem:[#allocation2 + $0xb0] sm:$0xff] %vm1323_vm0, %v1726_v15  ;;  %1347 = vst.msk [vmem:[#allocation2 + $0xb8] sm:$0xff] %vm1323_vm0, %v1727_v19  ;;  %v1441_v33 = vld [vmem:[#allocation2 + $0xa0] sm:$0xff]  ;;  %v1442_v1 = vld [vmem:[#allocation2 + $0xa8] sm:$0xff] }
 0x251   :  { %1411 = vst.msk [vmem:[#allocation2 + $0xb0] sm:$0xff] %vm1388_vm11, %v1378_v53  ;;  %1412 = vst.msk [vmem:[#allocation2 + $0xb8] sm:$0xff] %vm1388_vm11, %v1379_v61  ;;  %v1730_v45 = vpop.permute.xlu1 %1729  ;;  %v1463_v21 = vpack.c.bf16 %v1442_v1, %v1441_v33  ;;  %v3675_v53 = vld [vmem:[#allocation52_spill] sm:$0xff] }
 0x252   :  { %v1732_v12 = vunpack.i.h.bf16 %v1730_v45  ;;  %v1731_v41 = vunpack.i.l.bf16 %v1730_v45 }
 0x253   :  { %1487 = vxpose.xlu0.c.b16.cont [3/8] (narrow) %v1463_v21, 16 }
 0x254   :  { %1330 = vst.msk [vmem:[#allocation2 + $0x30] sm:$0xff] %vm1323_vm0, %v1731_v41  ;;  %1331 = vst.msk [vmem:[#allocation2 + $0x38] sm:$0xff] %vm1323_vm0, %v1732_v12  ;;  %v1425_v34 = vld [vmem:[#allocation2 + $0x20] sm:$0xff]  ;;  %v1426_v29 = vld [vmem:[#allocation2 + $0x28] sm:$0xff] }
 0x255   :  { %1395 = vst.msk [vmem:[#allocation2 + $0x30] sm:$0xff] %vm1388_vm11, %v1362_v38  ;;  %1396 = vst.msk [vmem:[#allocation2 + $0x38] sm:$0xff] %vm1388_vm11, %v1363_v36  ;;  %v1455_v35 = vpack.c.bf16 %v1426_v29, %v1425_v34  ;;  %v3678_v38 = vld [vmem:[#allocation58_spill] sm:$0xff] }
 0x256   :  { %v3679_v34 = vunpack.c.l.bf16 %v3678_v38  ;;  %v3680_v29 = vld [vmem:[#allocation54_spill] sm:$0xff] }
 0x257   :  { %1471 = vxpose.xlu1.c.b16.cont [3/8] (narrow) %v1455_v35, 16 }
 0x258   :  { %v1443_v2 = vld [vmem:[#allocation2 + $0xb0] sm:$0xff]  ;;  %v1444_v63 = vld [vmem:[#allocation2 + $0xb8] sm:$0xff]  ;;  %v1370_v35 = vsub.f32 %v3680_v29, %v3679_v34 }
 0x259   :  { %v1735_v40 = vpop.permute.xlu0 %1734  ;;  %v1464_v57 = vpack.c.bf16 %v1444_v63, %v1443_v2  ;;  %v3682_v2 = vld [vmem:[#allocation55_spill] sm:$0xff] }
 0x25a   :  { %v1737_v22 = vunpack.i.h.bf16 %v1735_v40  ;;  %v1736_v14 = vunpack.i.l.bf16 %v1735_v40  ;;  %v3681_v40 = vunpack.c.h.bf16 %v3678_v38 }
 0x25b   :  { %1488 = vxpose.xlu0.c.b16.cont [4/8] (narrow) %v1464_v57, 16 }
 0x25c   :  { %1348 = vst.msk [vmem:[#allocation2 + $0xc0] sm:$0xff] %vm1323_vm0, %v1736_v14  ;;  %1349 = vst.msk [vmem:[#allocation2 + $0xc8] sm:$0xff] %vm1323_vm0, %v1737_v22  ;;  %v1427_v47 = vld [vmem:[#allocation2 + $0x30] sm:$0xff]  ;;  %v1428_v5 = vld [vmem:[#allocation2 + $0x38] sm:$0xff]  ;;  %v1371_v63 = vsub.f32 %v3682_v2, %v3681_v40 }
 0x25d   :  { %1413 = vst.msk [vmem:[#allocation2 + $0xc0] sm:$0xff] %vm1388_vm11, %v2972_v11  ;;  %1414 = vst.msk [vmem:[#allocation2 + $0xc8] sm:$0xff] %vm1388_vm11, %v1381_v56  ;;  %v1740_v31 = vpop.permute.xlu1 %1739  ;;  %v1456_v62 = vpack.c.bf16 %v1428_v5, %v1427_v47 }
 0x25e   :  { %v1742_v51 = vunpack.i.h.bf16 %v1740_v31  ;;  %v1741_v44 = vunpack.i.l.bf16 %v1740_v31 }
 0x25f   :  { %1472 = vxpose.xlu1.c.b16.cont [4/8] (narrow) %v1456_v62, 16 }
 0x260   :  { %1332 = vst.msk [vmem:[#allocation2 + $0x40] sm:$0xff] %vm1323_vm0, %v1741_v44  ;;  %1333 = vst.msk [vmem:[#allocation2 + $0x48] sm:$0xff] %vm1323_vm0, %v1742_v51 }
 0x261   :  { %1397 = vst.msk [vmem:[#allocation2 + $0x40] sm:$0xff] %vm1388_vm11, %v3666_v13  ;;  %1398 = vst.msk [vmem:[#allocation2 + $0x48] sm:$0xff] %vm1388_vm11, %v3667_v48  ;;  %v1745_v11 = vpop.permute.xlu0 %1744 }
 0x262   :  { %v1747_v16 = vunpack.i.h.bf16 %v1745_v11  ;;  %v1746_v54 = vunpack.i.l.bf16 %v1745_v11 }
 0x264   :  { %v1445_v0 = vld [vmem:[#allocation2 + $0xc0] sm:$0xff]  ;;  %v1446_v27 = vld [vmem:[#allocation2 + $0xc8] sm:$0xff]  ;;  %1350 = vst.msk [vmem:[#allocation2 + $0xd0] sm:$0xff] %vm1323_vm0, %v1746_v54  ;;  %1351 = vst.msk [vmem:[#allocation2 + $0xd8] sm:$0xff] %vm1323_vm0, %v1747_v16 }
 0x265   :  { %v1465_v20 = vpack.c.bf16 %v1446_v27, %v1445_v0  ;;  %1415 = vst.msk [vmem:[#allocation2 + $0xd0] sm:$0xff] %vm1388_vm11, %v3668_v26  ;;  %1416 = vst.msk [vmem:[#allocation2 + $0xd8] sm:$0xff] %vm1388_vm11, %v3669_v10 }
 0x266   :  { %v1750_v18 = vpop.permute.xlu1 %1749 }
 0x267   :  { %1489 = vxpose.xlu0.c.b16.cont [5/8] (narrow) %v1465_v20, 16  ;;  %v1752_v52 = vunpack.i.h.bf16 %v1750_v18  ;;  %v1751_v23 = vunpack.i.l.bf16 %v1750_v18 }
 0x268   :  { %v1429_v43 = vld [vmem:[#allocation2 + $0x40] sm:$0xff]  ;;  %v1430_v30 = vld [vmem:[#allocation2 + $0x48] sm:$0xff] }
 0x269   :  { %v1457_v32 = vpack.c.bf16 %v1430_v30, %v1429_v43  ;;  %1334 = vst.msk [vmem:[#allocation2 + $0x50] sm:$0xff] %vm1323_vm0, %v1751_v23  ;;  %1335 = vst.msk [vmem:[#allocation2 + $0x58] sm:$0xff] %vm1323_vm0, %v1752_v52 }
 0x26a   :  { %1399 = vst.msk [vmem:[#allocation2 + $0x50] sm:$0xff] %vm1388_vm11, %v3670_v4  ;;  %1400 = vst.msk [vmem:[#allocation2 + $0x58] sm:$0xff] %vm1388_vm11, %v3671_v8 }
 0x26b   :  { %1473 = vxpose.xlu1.c.b16.cont [5/8] (narrow) %v1457_v32, 16 }
 0x26c   :  { %v1447_v24 = vld [vmem:[#allocation2 + $0xd0] sm:$0xff]  ;;  %v1448_v3 = vld [vmem:[#allocation2 + $0xd8] sm:$0xff] }
 0x26d   :  { %v1466_v39 = vpack.c.bf16 %v1448_v3, %v1447_v24 }
 0x26e   :  { %v1755_v28 = vpop.permute.xlu0 %1754 }
 0x26f   :  { %v1757_v9 = vunpack.i.h.bf16 %v1755_v28  ;;  %v1756_v6 = vunpack.i.l.bf16 %v1755_v28  ;;  %1490 = vxpose.xlu0.c.b16.cont [6/8] (narrow) %v1466_v39, 16 }
 0x271   :  { %1352 = vst.msk [vmem:[#allocation2 + $0xe0] sm:$0xff] %vm1323_vm0, %v1756_v6  ;;  %1353 = vst.msk [vmem:[#allocation2 + $0xe8] sm:$0xff] %vm1323_vm0, %v1757_v9  ;;  %v1431_v55 = vld [vmem:[#allocation2 + $0x50] sm:$0xff]  ;;  %v1432_v61 = vld [vmem:[#allocation2 + $0x58] sm:$0xff] }
 0x272   :  { %1417 = vst.msk [vmem:[#allocation2 + $0xe0] sm:$0xff] %vm1388_vm11, %v3672_v49  ;;  %1418 = vst.msk [vmem:[#allocation2 + $0xe8] sm:$0xff] %vm1388_vm11, %v3673_v60  ;;  %v1760_v19 = vpop.permute.xlu1 %1759  ;;  %v1458_v17 = vpack.c.bf16 %v1432_v61, %v1431_v55 }
 0x273   :  { %v1762_v15 = vunpack.i.h.bf16 %v1760_v19  ;;  %v1761_v46 = vunpack.i.l.bf16 %v1760_v19 }
 0x274   :  { %1474 = vxpose.xlu1.c.b16.cont [6/8] (narrow) %v1458_v17, 16 }
 0x275   :  { %1336 = vst.msk [vmem:[#allocation2 + $0x60] sm:$0xff] %vm1323_vm0, %v1761_v46  ;;  %1337 = vst.msk [vmem:[#allocation2 + $0x68] sm:$0xff] %vm1323_vm0, %v1762_v15 }
 0x276   :  { %1401 = vst.msk [vmem:[#allocation2 + $0x60] sm:$0xff] %vm1388_vm11, %v3674_v59  ;;  %1402 = vst.msk [vmem:[#allocation2 + $0x68] sm:$0xff] %vm1388_vm11, %v3675_v53  ;;  %v1765_v33 = vpop.permute.xlu0 %1764 }
 0x277   :  { %v1767_v1 = vunpack.i.h.bf16 %v1765_v33  ;;  %v1766_v45 = vunpack.i.l.bf16 %v1765_v33 }
 0x279   :  { %v1449_v21 = vld [vmem:[#allocation2 + $0xe0] sm:$0xff]  ;;  %v1450_v12 = vld [vmem:[#allocation2 + $0xe8] sm:$0xff]  ;;  %1354 = vst.msk [vmem:[#allocation2 + $0xf0] sm:$0xff] %vm1323_vm0, %v1766_v45  ;;  %1355 = vst.msk [vmem:[#allocation2 + $0xf8] sm:$0xff] %vm1323_vm0, %v1767_v1 }
 0x27a   :  { %v1467_v41 = vpack.c.bf16 %v1450_v12, %v1449_v21  ;;  %1419 = vst.msk [vmem:[#allocation2 + $0xf0] sm:$0xff] %vm1388_vm11, %v3676_v25  ;;  %1420 = vst.msk [vmem:[#allocation2 + $0xf8] sm:$0xff] %vm1388_vm11, %v3677_v50  ;;  %v1770_v36 = vpop.permute.xlu1 %1769 }
 0x27b   :  { %v1772_v7 = vunpack.i.h.bf16 %v1770_v36  ;;  %v1771_v37 = vunpack.i.l.bf16 %v1770_v36 }
 0x27c   :  { %1491 = vxpose.xlu0.c.b16.cont [7/8] (narrow) %v1467_v41, 16 }
 0x27d   :  { %1338 = vst.msk [vmem:[#allocation2 + $0x70] sm:$0xff] %vm1323_vm0, %v1771_v37  ;;  %1339 = vst.msk [vmem:[#allocation2 + $0x78] sm:$0xff] %vm1323_vm0, %v1772_v7  ;;  %v1433_v22 = vld [vmem:[#allocation2 + $0x60] sm:$0xff]  ;;  %v1434_v14 = vld [vmem:[#allocation2 + $0x68] sm:$0xff] }
 0x27e   :  { %1403 = vst.msk [vmem:[#allocation2 + $0x70] sm:$0xff] %vm1388_vm11, %v1370_v35  ;;  %1404 = vst.msk [vmem:[#allocation2 + $0x78] sm:$0xff] %vm1388_vm11, %v1371_v63  ;;  %v1459_v57 = vpack.c.bf16 %v1434_v14, %v1433_v22 }
 0x280   :  { %1475 = vxpose.xlu1.c.b16.cont [7/8] (narrow) %v1459_v57, 16 }
 0x281   :  { %v1451_v42 = vld [vmem:[#allocation2 + $0xf0] sm:$0xff]  ;;  %v1452_v58 = vld [vmem:[#allocation2 + $0xf8] sm:$0xff] }
 0x282   :  { %v1468_v56 = vpack.c.bf16 %v1452_v58, %v1451_v42 }
 0x284   :  { %1492 = vxpose.xlu0.c.b16.end [8/8] (narrow) %v1468_v56, 16 }
 0x285   :  { %v1435_v31 = vld [vmem:[#allocation2 + $0x70] sm:$0xff]  ;;  %v1436_v47 = vld [vmem:[#allocation2 + $0x78] sm:$0xff] }
 0x286   :  { %v1460_v5 = vpack.c.bf16 %v1436_v47, %v1435_v31 }
 0x288   :  { %1476 = vxpose.xlu1.c.b16.end [8/8] (narrow) %v1460_v5, 16 }
 0x2ce   :  { %v1493_v51 = vpop.trf.xlu0 }
 0x2cf   :  { %1533 = vmatprep.mubr.bf16.mxu0 %v1493_v51 }
 0x2d2   :  { %v1477_v44 = vpop.trf.xlu1 }
 0x2d3   :  { %1534 = vmatmul.mubr.bf16.vlgmr.msra.gmra.mrb[0].mxu0 %v1477_v44 }
 0x3a6   :  { %v1682_v62 = vpop.f32.mrb[0].mxu0 }
 0x3a7   :  { %v1683_v13 = vpop.f32.mrb[1].mxu0 }
 0x3a8   :  { %v1684_v48 = vadd.f32 %v1683_v13, %v1682_v62  ;;  %v1685_v11 = vpop.f32.mrb[2].mxu0 }
 0x3a9   :  { %v1686_v16 = vpop.f32.mrb[3].mxu0 }
 0x3aa   :  { %1543 = vst [vmem:[#allocation3] sm:$0xff] %v1684_v48 }
 0x3ab   :  { %1784 = shalt.err (!%p1781_p4)
}
 0x3ac   :  { %s1785_s28 = scalar_lea.hbm %s3460_s2, 128 }
 0x3ad   :  { %p1786_p5 = scmp.ne.s32.totalorder %s3460_s2, %s1785_s28  ;;  %p1789_p6 = scmp.lt.u32.totalorder %s1785_s28, %s3460_s2 }
 0x3af   :  { %p1791_p7 = pnand %p1789_p6, %p1786_p5 }
 0x3b1   :  { %1794 = shalt.err (!%p1791_p7)
}
 0x3b2   :  { %1553 = dma.vmem_to_hbm [thread:$0]  %s1551_s26, 128, %s3460_s2, [#allocation4]  }
 0x3b3   :  { %1795 = dma.done.wait [#allocation4], 128  }
 0x3b4   :  { %1796 = vsyncadd [#allocation4], 4294967168 }
 0x3b5   :  { %1557 = vsyncpa [#allocation4], 1 }

</bundles_post_ra>
